<compile_context>
chip_gen: v6e
topology: v6e:2x2x1
jax: 0.10.0
libtpu: 0.0.40
codegen_flags: <defaults>
</compile_context>

<pallas_src>
import jax
import jax.numpy as jnp
import numpy as np
from jax import lax
from jax.experimental import pallas as pl
from jax.experimental.pallas import tpu as pltpu

N_EMBED = 16
TAU = 1.0                 # SoftSort temperature (pow = 1, hard = False)
NEG_INF = float("-inf")


def _round_up(x: int, m: int) -> int:
    return ((x + m - 1) // m) * m


def shuffle_kernel(xcT_ref, maskT_ref, w1_ref, w2_ref, out_ref):
    """One block of BB batch elements; batch is the lane (last) dimension.

    xcT_ref : (2, N, BB) VMEM  -- xc features, position-major, batch in lanes
    maskT_ref: (N, BB)   VMEM  -- 1.0 == masked (True)
    w1_ref  : (2, 16)    SMEM  -- l1 weight, x @ w1 convention (torch weight.T)
    w2_ref  : (16,)      SMEM  -- l2 weight
    out_ref : (N, N, BB)       -- out[i, j, b] = SoftSort row i, column j
    """
    N = out_ref.shape[0]
    BB = out_ref.shape[2]
    n_hidden = w1_ref.shape[1]

    x0 = xcT_ref[0]                                   # (N, BB)
    x1 = xcT_ref[1]                                   # (N, BB)

    # --- l1 (no bias) + ReLU + l2 (no bias) on the VPU.
    # A (?,2)@(2,16) / (?,16)@(16,1) matmul wastes the MXU (K=2 / K=16), so
    # accumulate over the 16 hidden units with scalar weights from SMEM.
    s = jnp.zeros((N, BB), jnp.float32)
    for e in range(n_hidden):
        pre = x0 * w1_ref[0, e] + x1 * w1_ref[1, e]
        s = s + jnp.maximum(pre, 0.0) * w2_ref[e]

    # masked_fill(mask, -inf)
    s = jnp.where(maskT_ref[...] > 0.5, NEG_INF, s)   # (N, BB)

    pos = lax.broadcasted_iota(jnp.int32, (N, BB), 0)  # position index per row

    # --- descending rank of every position (index tie-break == stable sort):
    # rank[i, b] = #{a : s[a,b] > s[i,b]} + #{a < i : s[a,b] == s[i,b]}
    # Both comparison operands come from the SAME s array (pure broadcasts),
    # so ties are handled exactly and the ranks are always a permutation.
    rank = jnp.zeros((N, BB), jnp.int32)
    for a in range(N):
        s_a = s[a:a + 1, :]                           # (1, BB)
        beats = (s_a > s) | ((s_a == s) & (a < pos))
        rank = rank + beats.astype(jnp.int32)

    # --- sorted (descending) scores via exact one-hot selection:
    # sorted[k, b] = s[a, b] where rank[a, b] == k
    sorted_s = jnp.zeros((N, BB), jnp.float32)
    for a in range(N):
        sel = rank[a:a + 1, :] == pos                 # (N_k, BB)
        sorted_s = sorted_s + jnp.where(sel, s[a:a + 1, :], 0.0)

    # --- SoftSort: P[i, j, b] = softmax_j(-|s[j, b] - sorted[i, b]| / tau)
    # pd <= 0 and each finite row contains an exact 0 (sorted value == some
    # score), so the usual max-subtraction is a provable no-op and is skipped.
    for i in range(N):
        pd = -jnp.abs(s - sorted_s[i:i + 1, :])       # (N_j, BB)
        if TAU != 1.0:
            pd = pd * (1.0 / TAU)                     # multiply, never divide
        ex = jnp.exp(pd)
        denom = jnp.sum(ex, axis=0, keepdims=True)    # (1, BB)
        out_ref[i] = ex * (1.0 / denom)               # lane-dense (N, BB) store


def shuffle_forward(xc, mask, w1, w2, *, block_b: int = 128):
    """xc: (B, N, 2), mask: (B, N) bool, w1: (2, 16), w2: (16, 1) or (16,)."""
    B, N, F = xc.shape
    assert F == 2
    BB = min(block_b, _round_up(B, 8))      # batch elements per grid step
    padded_B = _round_up(B, BB)
    G = padded_B // BB
    pad = padded_B - B

    xc_p = jnp.pad(xc.astype(jnp.float32), ((0, pad), (0, 0), (0, 0)))
    mask_p = jnp.pad(mask.astype(jnp.float32), ((0, pad), (0, 0)))

    # Layout plumbing: batch-within-block goes to the lane (last) dimension.
    xcT = xc_p.reshape(G, BB, N, F).transpose(0, 3, 2, 1)      # (G, 2, N, BB)
    maskT = mask_p.reshape(G, BB, N).transpose(0, 2, 1)        # (G, N, BB)
    w1v = jnp.asarray(w1, jnp.float32).reshape(F, N_EMBED)     # (2, 16)
    w2v = jnp.asarray(w2, jnp.float32).reshape(N_EMBED)        # (16,)

    out = pl.pallas_call(
        shuffle_kernel,
        out_shape=jax.ShapeDtypeStruct((G, N, N, BB), jnp.float32),
        grid_spec=pltpu.PrefetchScalarGridSpec(
            num_scalar_prefetch=0,
            grid=(G,),
            in_specs=[
                pl.BlockSpec((None, F, N, BB), lambda g: (g, 0, 0, 0)),
                pl.BlockSpec((None, N, BB), lambda g: (g, 0, 0)),
                pl.BlockSpec(memory_space=pltpu.MemorySpace.SMEM),
                pl.BlockSpec(memory_space=pltpu.MemorySpace.SMEM),
            ],
            out_specs=pl.BlockSpec((None, N, N, BB), lambda g: (g, 0, 0, 0)),
        ),
        compiler_params=pltpu.CompilerParams(
            dimension_semantics=("parallel",)),   # >= 2 blocks -> both v7x TCs
    )(xcT, maskT, w1v, w2v)

    # (G, N, N, BB) -> (B, N, N)
    out = out.transpose(0, 3, 1, 2).reshape(padded_B, N, N)
    return out[:B]


def _reference(xc, mask, w1, w2):
    s = jnp.maximum(xc @ w1, 0.0) @ w2                  # (B, N, 1)
    s = jnp.where(mask, -jnp.inf, s[..., 0])            # (B, N)
    srt = -jnp.sort(-s, axis=-1)                        # descending
    return jax.nn.softmax(-jnp.abs(s[:, None, :] - srt[:, :, None]) / TAU,
                          axis=-1)


if __name__ == "__main__":
    key = jax.random.PRNGKey(0)
    k_x, k_w1, k_w2, k_x2 = jax.random.split(key, 4)

    # Deterministic params mimicking nn.Linear's U(-1/sqrt(fan_in), ...),
    # stored already transposed relative to torch (.weight.T) so y = x @ w.
    w1 = jax.random.uniform(k_w1, (2, N_EMBED), jnp.float32,
                            -1.0 / np.sqrt(2.0), 1.0 / np.sqrt(2.0))
    w2 = jax.random.uniform(k_w2, (N_EMBED, 1), jnp.float32,
                            -1.0 / np.sqrt(float(N_EMBED)),
                            1.0 / np.sqrt(float(N_EMBED)))

    # --- small check: B=16, N=8 (one grid step, 16 batch elements per step).
    # All-False mask: any True entry gives -inf scores and (exactly like
    # PyTorch masked_fill + SoftSort) NaN rows, making numeric checks moot.
    B, N = 16, 8
    xc = jax.random.normal(k_x, (B, N, 2), dtype=jnp.float32)
    mask = jnp.zeros((B, N), dtype=bool)
    out = jax.block_until_ready(shuffle_forward(xc, mask, w1, w2))
    ref = _reference(xc, mask, w1, w2)
    assert out.shape == (B, N, N), out.shape
    assert np.allclose(np.asarray(out), np.asarray(ref), atol=1e-5, rtol=1e-5)

    # --- second check: B=200 exercises padding, BB=128 lane-dense blocks and
    # a 2-step parallel grid (both TensorCores on v7x).
    B2 = 200
    xc2 = jax.random.normal(k_x2, (B2, N, 2), dtype=jnp.float32)
    mask2 = jnp.zeros((B2, N), dtype=bool)
    out2 = jax.block_until_ready(shuffle_forward(xc2, mask2, w1, w2))
    ref2 = _reference(xc2, mask2, w1, w2)
    assert out2.shape == (B2, N, N), out2.shape
    assert np.allclose(np.asarray(out2), np.asarray(ref2), atol=1e-5, rtol=1e-5)

    print("KERNEL_OK")
</pallas_src>

<mosaic_0001>
module attributes {stable_mosaic.version = 11 : i64} {
  func.func @shuffle_kernel(%arg0: i32, %arg1: memref<1x2x8x16xf32, #tpu.memory_space<vmem>>, %arg2: memref<1x8x16xf32, #tpu.memory_space<vmem>>, %arg3: memref<2x16xf32, #tpu.memory_space<smem>>, %arg4: memref<16xf32, #tpu.memory_space<smem>>, %arg5: memref<1x8x8x16xf32, #tpu.memory_space<vmem>>) attributes {dimension_semantics = [#tpu.dimension_semantics<parallel>], iteration_bounds = array<i64: 1>, scalar_prefetch = 0 : i64, scratch_operands = 0 : i64, tpu.core_type = #tpu.core_type<tc>, window_params = [{transform_indices = @transform_0, window_bounds = array<i64: 1, 2, 8, 16>}, {transform_indices = @transform_1, window_bounds = array<i64: 1, 8, 16>}, {transform_indices = @transform_2, window_bounds = array<i64: 2, 16>}, {transform_indices = @transform_3, window_bounds = array<i64: 16>}, {transform_indices = @transform_4, window_bounds = array<i64: 1, 8, 8, 16>}]} {
    %c0 = arith.constant 0 : index
    %c0_0 = arith.constant 0 : index
    %c0_1 = arith.constant 0 : index
    %c0_2 = arith.constant 0 : index
    %0 = vector.load %arg1[%c0, %c0_0, %c0_1, %c0_2] : memref<1x2x8x16xf32, #tpu.memory_space<vmem>>, vector<1x1x8x16xf32>
    %1 = vector.shape_cast %0 : vector<1x1x8x16xf32> to vector<8x16xf32>
    %c0_3 = arith.constant 0 : index
    %c1 = arith.constant 1 : index
    %c0_4 = arith.constant 0 : index
    %c0_5 = arith.constant 0 : index
    %2 = vector.load %arg1[%c0_3, %c1, %c0_4, %c0_5] : memref<1x2x8x16xf32, #tpu.memory_space<vmem>>, vector<1x1x8x16xf32>
    %3 = vector.shape_cast %2 : vector<1x1x8x16xf32> to vector<8x16xf32>
    %cst = arith.constant 0.000000e+00 : f32
    %4 = vector.broadcast %cst : f32 to vector<8x16xf32>
    %c0_6 = arith.constant 0 : index
    %c0_7 = arith.constant 0 : index
    %5 = memref.load %arg3[%c0_6, %c0_7] : memref<2x16xf32, #tpu.memory_space<smem>>
    %6 = vector.broadcast %5 : f32 to vector<8x16xf32>
    %7 = arith.mulf %1, %6 : vector<8x16xf32>
    %c1_8 = arith.constant 1 : index
    %c0_9 = arith.constant 0 : index
    %8 = memref.load %arg3[%c1_8, %c0_9] : memref<2x16xf32, #tpu.memory_space<smem>>
    %9 = vector.broadcast %8 : f32 to vector<8x16xf32>
    %10 = arith.mulf %3, %9 : vector<8x16xf32>
    %11 = arith.addf %7, %10 : vector<8x16xf32>
    %cst_10 = arith.constant 0.000000e+00 : f32
    %12 = vector.broadcast %cst_10 : f32 to vector<8x16xf32>
    %13 = arith.maximumf %11, %12 : vector<8x16xf32>
    %c0_11 = arith.constant 0 : index
    %14 = memref.load %arg4[%c0_11] : memref<16xf32, #tpu.memory_space<smem>>
    %15 = vector.broadcast %14 : f32 to vector<8x16xf32>
    %16 = arith.mulf %13, %15 : vector<8x16xf32>
    %17 = arith.addf %4, %16 : vector<8x16xf32>
    %c0_12 = arith.constant 0 : index
    %c1_13 = arith.constant 1 : index
    %18 = memref.load %arg3[%c0_12, %c1_13] : memref<2x16xf32, #tpu.memory_space<smem>>
    %19 = vector.broadcast %18 : f32 to vector<8x16xf32>
    %20 = arith.mulf %1, %19 : vector<8x16xf32>
    %c1_14 = arith.constant 1 : index
    %c1_15 = arith.constant 1 : index
    %21 = memref.load %arg3[%c1_14, %c1_15] : memref<2x16xf32, #tpu.memory_space<smem>>
    %22 = vector.broadcast %21 : f32 to vector<8x16xf32>
    %23 = arith.mulf %3, %22 : vector<8x16xf32>
    %24 = arith.addf %20, %23 : vector<8x16xf32>
    %cst_16 = arith.constant 0.000000e+00 : f32
    %25 = vector.broadcast %cst_16 : f32 to vector<8x16xf32>
    %26 = arith.maximumf %24, %25 : vector<8x16xf32>
    %c1_17 = arith.constant 1 : index
    %27 = memref.load %arg4[%c1_17] : memref<16xf32, #tpu.memory_space<smem>>
    %28 = vector.broadcast %27 : f32 to vector<8x16xf32>
    %29 = arith.mulf %26, %28 : vector<8x16xf32>
    %30 = arith.addf %17, %29 : vector<8x16xf32>
    %c0_18 = arith.constant 0 : index
    %c2 = arith.constant 2 : index
    %31 = memref.load %arg3[%c0_18, %c2] : memref<2x16xf32, #tpu.memory_space<smem>>
    %32 = vector.broadcast %31 : f32 to vector<8x16xf32>
    %33 = arith.mulf %1, %32 : vector<8x16xf32>
    %c1_19 = arith.constant 1 : index
    %c2_20 = arith.constant 2 : index
    %34 = memref.load %arg3[%c1_19, %c2_20] : memref<2x16xf32, #tpu.memory_space<smem>>
    %35 = vector.broadcast %34 : f32 to vector<8x16xf32>
    %36 = arith.mulf %3, %35 : vector<8x16xf32>
    %37 = arith.addf %33, %36 : vector<8x16xf32>
    %cst_21 = arith.constant 0.000000e+00 : f32
    %38 = vector.broadcast %cst_21 : f32 to vector<8x16xf32>
    %39 = arith.maximumf %37, %38 : vector<8x16xf32>
    %c2_22 = arith.constant 2 : index
    %40 = memref.load %arg4[%c2_22] : memref<16xf32, #tpu.memory_space<smem>>
    %41 = vector.broadcast %40 : f32 to vector<8x16xf32>
    %42 = arith.mulf %39, %41 : vector<8x16xf32>
    %43 = arith.addf %30, %42 : vector<8x16xf32>
    %c0_23 = arith.constant 0 : index
    %c3 = arith.constant 3 : index
    %44 = memref.load %arg3[%c0_23, %c3] : memref<2x16xf32, #tpu.memory_space<smem>>
    %45 = vector.broadcast %44 : f32 to vector<8x16xf32>
    %46 = arith.mulf %1, %45 : vector<8x16xf32>
    %c1_24 = arith.constant 1 : index
    %c3_25 = arith.constant 3 : index
    %47 = memref.load %arg3[%c1_24, %c3_25] : memref<2x16xf32, #tpu.memory_space<smem>>
    %48 = vector.broadcast %47 : f32 to vector<8x16xf32>
    %49 = arith.mulf %3, %48 : vector<8x16xf32>
    %50 = arith.addf %46, %49 : vector<8x16xf32>
    %cst_26 = arith.constant 0.000000e+00 : f32
    %51 = vector.broadcast %cst_26 : f32 to vector<8x16xf32>
    %52 = arith.maximumf %50, %51 : vector<8x16xf32>
    %c3_27 = arith.constant 3 : index
    %53 = memref.load %arg4[%c3_27] : memref<16xf32, #tpu.memory_space<smem>>
    %54 = vector.broadcast %53 : f32 to vector<8x16xf32>
    %55 = arith.mulf %52, %54 : vector<8x16xf32>
    %56 = arith.addf %43, %55 : vector<8x16xf32>
    %c0_28 = arith.constant 0 : index
    %c4 = arith.constant 4 : index
    %57 = memref.load %arg3[%c0_28, %c4] : memref<2x16xf32, #tpu.memory_space<smem>>
    %58 = vector.broadcast %57 : f32 to vector<8x16xf32>
    %59 = arith.mulf %1, %58 : vector<8x16xf32>
    %c1_29 = arith.constant 1 : index
    %c4_30 = arith.constant 4 : index
    %60 = memref.load %arg3[%c1_29, %c4_30] : memref<2x16xf32, #tpu.memory_space<smem>>
    %61 = vector.broadcast %60 : f32 to vector<8x16xf32>
    %62 = arith.mulf %3, %61 : vector<8x16xf32>
    %63 = arith.addf %59, %62 : vector<8x16xf32>
    %cst_31 = arith.constant 0.000000e+00 : f32
    %64 = vector.broadcast %cst_31 : f32 to vector<8x16xf32>
    %65 = arith.maximumf %63, %64 : vector<8x16xf32>
    %c4_32 = arith.constant 4 : index
    %66 = memref.load %arg4[%c4_32] : memref<16xf32, #tpu.memory_space<smem>>
    %67 = vector.broadcast %66 : f32 to vector<8x16xf32>
    %68 = arith.mulf %65, %67 : vector<8x16xf32>
    %69 = arith.addf %56, %68 : vector<8x16xf32>
    %c0_33 = arith.constant 0 : index
    %c5 = arith.constant 5 : index
    %70 = memref.load %arg3[%c0_33, %c5] : memref<2x16xf32, #tpu.memory_space<smem>>
    %71 = vector.broadcast %70 : f32 to vector<8x16xf32>
    %72 = arith.mulf %1, %71 : vector<8x16xf32>
    %c1_34 = arith.constant 1 : index
    %c5_35 = arith.constant 5 : index
    %73 = memref.load %arg3[%c1_34, %c5_35] : memref<2x16xf32, #tpu.memory_space<smem>>
    %74 = vector.broadcast %73 : f32 to vector<8x16xf32>
    %75 = arith.mulf %3, %74 : vector<8x16xf32>
    %76 = arith.addf %72, %75 : vector<8x16xf32>
    %cst_36 = arith.constant 0.000000e+00 : f32
    %77 = vector.broadcast %cst_36 : f32 to vector<8x16xf32>
    %78 = arith.maximumf %76, %77 : vector<8x16xf32>
    %c5_37 = arith.constant 5 : index
    %79 = memref.load %arg4[%c5_37] : memref<16xf32, #tpu.memory_space<smem>>
    %80 = vector.broadcast %79 : f32 to vector<8x16xf32>
    %81 = arith.mulf %78, %80 : vector<8x16xf32>
    %82 = arith.addf %69, %81 : vector<8x16xf32>
    %c0_38 = arith.constant 0 : index
    %c6 = arith.constant 6 : index
    %83 = memref.load %arg3[%c0_38, %c6] : memref<2x16xf32, #tpu.memory_space<smem>>
    %84 = vector.broadcast %83 : f32 to vector<8x16xf32>
    %85 = arith.mulf %1, %84 : vector<8x16xf32>
    %c1_39 = arith.constant 1 : index
    %c6_40 = arith.constant 6 : index
    %86 = memref.load %arg3[%c1_39, %c6_40] : memref<2x16xf32, #tpu.memory_space<smem>>
    %87 = vector.broadcast %86 : f32 to vector<8x16xf32>
    %88 = arith.mulf %3, %87 : vector<8x16xf32>
    %89 = arith.addf %85, %88 : vector<8x16xf32>
    %cst_41 = arith.constant 0.000000e+00 : f32
    %90 = vector.broadcast %cst_41 : f32 to vector<8x16xf32>
    %91 = arith.maximumf %89, %90 : vector<8x16xf32>
    %c6_42 = arith.constant 6 : index
    %92 = memref.load %arg4[%c6_42] : memref<16xf32, #tpu.memory_space<smem>>
    %93 = vector.broadcast %92 : f32 to vector<8x16xf32>
    %94 = arith.mulf %91, %93 : vector<8x16xf32>
    %95 = arith.addf %82, %94 : vector<8x16xf32>
    %c0_43 = arith.constant 0 : index
    %c7 = arith.constant 7 : index
    %96 = memref.load %arg3[%c0_43, %c7] : memref<2x16xf32, #tpu.memory_space<smem>>
    %97 = vector.broadcast %96 : f32 to vector<8x16xf32>
    %98 = arith.mulf %1, %97 : vector<8x16xf32>
    %c1_44 = arith.constant 1 : index
    %c7_45 = arith.constant 7 : index
    %99 = memref.load %arg3[%c1_44, %c7_45] : memref<2x16xf32, #tpu.memory_space<smem>>
    %100 = vector.broadcast %99 : f32 to vector<8x16xf32>
    %101 = arith.mulf %3, %100 : vector<8x16xf32>
    %102 = arith.addf %98, %101 : vector<8x16xf32>
    %cst_46 = arith.constant 0.000000e+00 : f32
    %103 = vector.broadcast %cst_46 : f32 to vector<8x16xf32>
    %104 = arith.maximumf %102, %103 : vector<8x16xf32>
    %c7_47 = arith.constant 7 : index
    %105 = memref.load %arg4[%c7_47] : memref<16xf32, #tpu.memory_space<smem>>
    %106 = vector.broadcast %105 : f32 to vector<8x16xf32>
    %107 = arith.mulf %104, %106 : vector<8x16xf32>
    %108 = arith.addf %95, %107 : vector<8x16xf32>
    %c0_48 = arith.constant 0 : index
    %c8 = arith.constant 8 : index
    %109 = memref.load %arg3[%c0_48, %c8] : memref<2x16xf32, #tpu.memory_space<smem>>
    %110 = vector.broadcast %109 : f32 to vector<8x16xf32>
    %111 = arith.mulf %1, %110 : vector<8x16xf32>
    %c1_49 = arith.constant 1 : index
    %c8_50 = arith.constant 8 : index
    %112 = memref.load %arg3[%c1_49, %c8_50] : memref<2x16xf32, #tpu.memory_space<smem>>
    %113 = vector.broadcast %112 : f32 to vector<8x16xf32>
    %114 = arith.mulf %3, %113 : vector<8x16xf32>
    %115 = arith.addf %111, %114 : vector<8x16xf32>
    %cst_51 = arith.constant 0.000000e+00 : f32
    %116 = vector.broadcast %cst_51 : f32 to vector<8x16xf32>
    %117 = arith.maximumf %115, %116 : vector<8x16xf32>
    %c8_52 = arith.constant 8 : index
    %118 = memref.load %arg4[%c8_52] : memref<16xf32, #tpu.memory_space<smem>>
    %119 = vector.broadcast %118 : f32 to vector<8x16xf32>
    %120 = arith.mulf %117, %119 : vector<8x16xf32>
    %121 = arith.addf %108, %120 : vector<8x16xf32>
    %c0_53 = arith.constant 0 : index
    %c9 = arith.constant 9 : index
    %122 = memref.load %arg3[%c0_53, %c9] : memref<2x16xf32, #tpu.memory_space<smem>>
    %123 = vector.broadcast %122 : f32 to vector<8x16xf32>
    %124 = arith.mulf %1, %123 : vector<8x16xf32>
    %c1_54 = arith.constant 1 : index
    %c9_55 = arith.constant 9 : index
    %125 = memref.load %arg3[%c1_54, %c9_55] : memref<2x16xf32, #tpu.memory_space<smem>>
    %126 = vector.broadcast %125 : f32 to vector<8x16xf32>
    %127 = arith.mulf %3, %126 : vector<8x16xf32>
    %128 = arith.addf %124, %127 : vector<8x16xf32>
    %cst_56 = arith.constant 0.000000e+00 : f32
    %129 = vector.broadcast %cst_56 : f32 to vector<8x16xf32>
    %130 = arith.maximumf %128, %129 : vector<8x16xf32>
    %c9_57 = arith.constant 9 : index
    %131 = memref.load %arg4[%c9_57] : memref<16xf32, #tpu.memory_space<smem>>
    %132 = vector.broadcast %131 : f32 to vector<8x16xf32>
    %133 = arith.mulf %130, %132 : vector<8x16xf32>
    %134 = arith.addf %121, %133 : vector<8x16xf32>
    %c0_58 = arith.constant 0 : index
    %c10 = arith.constant 10 : index
    %135 = memref.load %arg3[%c0_58, %c10] : memref<2x16xf32, #tpu.memory_space<smem>>
    %136 = vector.broadcast %135 : f32 to vector<8x16xf32>
    %137 = arith.mulf %1, %136 : vector<8x16xf32>
    %c1_59 = arith.constant 1 : index
    %c10_60 = arith.constant 10 : index
    %138 = memref.load %arg3[%c1_59, %c10_60] : memref<2x16xf32, #tpu.memory_space<smem>>
    %139 = vector.broadcast %138 : f32 to vector<8x16xf32>
    %140 = arith.mulf %3, %139 : vector<8x16xf32>
    %141 = arith.addf %137, %140 : vector<8x16xf32>
    %cst_61 = arith.constant 0.000000e+00 : f32
    %142 = vector.broadcast %cst_61 : f32 to vector<8x16xf32>
    %143 = arith.maximumf %141, %142 : vector<8x16xf32>
    %c10_62 = arith.constant 10 : index
    %144 = memref.load %arg4[%c10_62] : memref<16xf32, #tpu.memory_space<smem>>
    %145 = vector.broadcast %144 : f32 to vector<8x16xf32>
    %146 = arith.mulf %143, %145 : vector<8x16xf32>
    %147 = arith.addf %134, %146 : vector<8x16xf32>
    %c0_63 = arith.constant 0 : index
    %c11 = arith.constant 11 : index
    %148 = memref.load %arg3[%c0_63, %c11] : memref<2x16xf32, #tpu.memory_space<smem>>
    %149 = vector.broadcast %148 : f32 to vector<8x16xf32>
    %150 = arith.mulf %1, %149 : vector<8x16xf32>
    %c1_64 = arith.constant 1 : index
    %c11_65 = arith.constant 11 : index
    %151 = memref.load %arg3[%c1_64, %c11_65] : memref<2x16xf32, #tpu.memory_space<smem>>
    %152 = vector.broadcast %151 : f32 to vector<8x16xf32>
    %153 = arith.mulf %3, %152 : vector<8x16xf32>
    %154 = arith.addf %150, %153 : vector<8x16xf32>
    %cst_66 = arith.constant 0.000000e+00 : f32
    %155 = vector.broadcast %cst_66 : f32 to vector<8x16xf32>
    %156 = arith.maximumf %154, %155 : vector<8x16xf32>
    %c11_67 = arith.constant 11 : index
    %157 = memref.load %arg4[%c11_67] : memref<16xf32, #tpu.memory_space<smem>>
    %158 = vector.broadcast %157 : f32 to vector<8x16xf32>
    %159 = arith.mulf %156, %158 : vector<8x16xf32>
    %160 = arith.addf %147, %159 : vector<8x16xf32>
    %c0_68 = arith.constant 0 : index
    %c12 = arith.constant 12 : index
    %161 = memref.load %arg3[%c0_68, %c12] : memref<2x16xf32, #tpu.memory_space<smem>>
    %162 = vector.broadcast %161 : f32 to vector<8x16xf32>
    %163 = arith.mulf %1, %162 : vector<8x16xf32>
    %c1_69 = arith.constant 1 : index
    %c12_70 = arith.constant 12 : index
    %164 = memref.load %arg3[%c1_69, %c12_70] : memref<2x16xf32, #tpu.memory_space<smem>>
    %165 = vector.broadcast %164 : f32 to vector<8x16xf32>
    %166 = arith.mulf %3, %165 : vector<8x16xf32>
    %167 = arith.addf %163, %166 : vector<8x16xf32>
    %cst_71 = arith.constant 0.000000e+00 : f32
    %168 = vector.broadcast %cst_71 : f32 to vector<8x16xf32>
    %169 = arith.maximumf %167, %168 : vector<8x16xf32>
    %c12_72 = arith.constant 12 : index
    %170 = memref.load %arg4[%c12_72] : memref<16xf32, #tpu.memory_space<smem>>
    %171 = vector.broadcast %170 : f32 to vector<8x16xf32>
    %172 = arith.mulf %169, %171 : vector<8x16xf32>
    %173 = arith.addf %160, %172 : vector<8x16xf32>
    %c0_73 = arith.constant 0 : index
    %c13 = arith.constant 13 : index
    %174 = memref.load %arg3[%c0_73, %c13] : memref<2x16xf32, #tpu.memory_space<smem>>
    %175 = vector.broadcast %174 : f32 to vector<8x16xf32>
    %176 = arith.mulf %1, %175 : vector<8x16xf32>
    %c1_74 = arith.constant 1 : index
    %c13_75 = arith.constant 13 : index
    %177 = memref.load %arg3[%c1_74, %c13_75] : memref<2x16xf32, #tpu.memory_space<smem>>
    %178 = vector.broadcast %177 : f32 to vector<8x16xf32>
    %179 = arith.mulf %3, %178 : vector<8x16xf32>
    %180 = arith.addf %176, %179 : vector<8x16xf32>
    %cst_76 = arith.constant 0.000000e+00 : f32
    %181 = vector.broadcast %cst_76 : f32 to vector<8x16xf32>
    %182 = arith.maximumf %180, %181 : vector<8x16xf32>
    %c13_77 = arith.constant 13 : index
    %183 = memref.load %arg4[%c13_77] : memref<16xf32, #tpu.memory_space<smem>>
    %184 = vector.broadcast %183 : f32 to vector<8x16xf32>
    %185 = arith.mulf %182, %184 : vector<8x16xf32>
    %186 = arith.addf %173, %185 : vector<8x16xf32>
    %c0_78 = arith.constant 0 : index
    %c14 = arith.constant 14 : index
    %187 = memref.load %arg3[%c0_78, %c14] : memref<2x16xf32, #tpu.memory_space<smem>>
    %188 = vector.broadcast %187 : f32 to vector<8x16xf32>
    %189 = arith.mulf %1, %188 : vector<8x16xf32>
    %c1_79 = arith.constant 1 : index
    %c14_80 = arith.constant 14 : index
    %190 = memref.load %arg3[%c1_79, %c14_80] : memref<2x16xf32, #tpu.memory_space<smem>>
    %191 = vector.broadcast %190 : f32 to vector<8x16xf32>
    %192 = arith.mulf %3, %191 : vector<8x16xf32>
    %193 = arith.addf %189, %192 : vector<8x16xf32>
    %cst_81 = arith.constant 0.000000e+00 : f32
    %194 = vector.broadcast %cst_81 : f32 to vector<8x16xf32>
    %195 = arith.maximumf %193, %194 : vector<8x16xf32>
    %c14_82 = arith.constant 14 : index
    %196 = memref.load %arg4[%c14_82] : memref<16xf32, #tpu.memory_space<smem>>
    %197 = vector.broadcast %196 : f32 to vector<8x16xf32>
    %198 = arith.mulf %195, %197 : vector<8x16xf32>
    %199 = arith.addf %186, %198 : vector<8x16xf32>
    %c0_83 = arith.constant 0 : index
    %c15 = arith.constant 15 : index
    %200 = memref.load %arg3[%c0_83, %c15] : memref<2x16xf32, #tpu.memory_space<smem>>
    %201 = vector.broadcast %200 : f32 to vector<8x16xf32>
    %202 = arith.mulf %1, %201 : vector<8x16xf32>
    %c1_84 = arith.constant 1 : index
    %c15_85 = arith.constant 15 : index
    %203 = memref.load %arg3[%c1_84, %c15_85] : memref<2x16xf32, #tpu.memory_space<smem>>
    %204 = vector.broadcast %203 : f32 to vector<8x16xf32>
    %205 = arith.mulf %3, %204 : vector<8x16xf32>
    %206 = arith.addf %202, %205 : vector<8x16xf32>
    %cst_86 = arith.constant 0.000000e+00 : f32
    %207 = vector.broadcast %cst_86 : f32 to vector<8x16xf32>
    %208 = arith.maximumf %206, %207 : vector<8x16xf32>
    %c15_87 = arith.constant 15 : index
    %209 = memref.load %arg4[%c15_87] : memref<16xf32, #tpu.memory_space<smem>>
    %210 = vector.broadcast %209 : f32 to vector<8x16xf32>
    %211 = arith.mulf %208, %210 : vector<8x16xf32>
    %212 = arith.addf %199, %211 : vector<8x16xf32>
    %c0_88 = arith.constant 0 : index
    %c0_89 = arith.constant 0 : index
    %c0_90 = arith.constant 0 : index
    %213 = vector.load %arg2[%c0_88, %c0_89, %c0_90] : memref<1x8x16xf32, #tpu.memory_space<vmem>>, vector<1x8x16xf32>
    %214 = vector.shape_cast %213 : vector<1x8x16xf32> to vector<8x16xf32>
    %cst_91 = arith.constant 5.000000e-01 : f32
    %215 = vector.broadcast %cst_91 : f32 to vector<8x16xf32>
    %216 = arith.cmpf ogt, %214, %215 : vector<8x16xf32>
    %cst_92 = arith.constant 0xFF800000 : f32
    %217 = vector.broadcast %cst_92 : f32 to vector<8x16xf32>
    %218 = arith.select %216, %217, %212 : vector<8x16xi1>, vector<8x16xf32>
    %219 = tpu.iota {dimensions = array<i32: 0>} : vector<8x16xi32>
    %c0_i32 = arith.constant 0 : i32
    %220 = vector.broadcast %c0_i32 : i32 to vector<8x16xi32>
    %221 = vector.extract_strided_slice %218 {offsets = [0, 0], sizes = [1, 16], strides = [1, 1]} : vector<8x16xf32> to vector<1x16xf32>
    %222 = vector.broadcast %221 : vector<1x16xf32> to vector<8x16xf32>
    %223 = arith.cmpf ogt, %222, %218 : vector<8x16xf32>
    %224 = vector.broadcast %221 : vector<1x16xf32> to vector<8x16xf32>
    %225 = arith.cmpf oeq, %224, %218 : vector<8x16xf32>
    %c0_i32_93 = arith.constant 0 : i32
    %226 = vector.broadcast %c0_i32_93 : i32 to vector<8x16xi32>
    %227 = arith.cmpi sgt, %219, %226 : vector<8x16xi32>
    %228 = arith.andi %225, %227 : vector<8x16xi1>
    %229 = arith.ori %223, %228 : vector<8x16xi1>
    %230 = arith.extui %229 : vector<8x16xi1> to vector<8x16xi32>
    %231 = arith.addi %220, %230 : vector<8x16xi32>
    %232 = vector.extract_strided_slice %218 {offsets = [1, 0], sizes = [1, 16], strides = [1, 1]} : vector<8x16xf32> to vector<1x16xf32>
    %233 = vector.broadcast %232 : vector<1x16xf32> to vector<8x16xf32>
    %234 = arith.cmpf ogt, %233, %218 : vector<8x16xf32>
    %235 = vector.broadcast %232 : vector<1x16xf32> to vector<8x16xf32>
    %236 = arith.cmpf oeq, %235, %218 : vector<8x16xf32>
    %c1_i32 = arith.constant 1 : i32
    %237 = vector.broadcast %c1_i32 : i32 to vector<8x16xi32>
    %238 = arith.cmpi sgt, %219, %237 : vector<8x16xi32>
    %239 = arith.andi %236, %238 : vector<8x16xi1>
    %240 = arith.ori %234, %239 : vector<8x16xi1>
    %241 = arith.extui %240 : vector<8x16xi1> to vector<8x16xi32>
    %242 = arith.addi %231, %241 : vector<8x16xi32>
    %243 = vector.extract_strided_slice %218 {offsets = [2, 0], sizes = [1, 16], strides = [1, 1]} : vector<8x16xf32> to vector<1x16xf32>
    %244 = vector.broadcast %243 : vector<1x16xf32> to vector<8x16xf32>
    %245 = arith.cmpf ogt, %244, %218 : vector<8x16xf32>
    %246 = vector.broadcast %243 : vector<1x16xf32> to vector<8x16xf32>
    %247 = arith.cmpf oeq, %246, %218 : vector<8x16xf32>
    %c2_i32 = arith.constant 2 : i32
    %248 = vector.broadcast %c2_i32 : i32 to vector<8x16xi32>
    %249 = arith.cmpi sgt, %219, %248 : vector<8x16xi32>
    %250 = arith.andi %247, %249 : vector<8x16xi1>
    %251 = arith.ori %245, %250 : vector<8x16xi1>
    %252 = arith.extui %251 : vector<8x16xi1> to vector<8x16xi32>
    %253 = arith.addi %242, %252 : vector<8x16xi32>
    %254 = vector.extract_strided_slice %218 {offsets = [3, 0], sizes = [1, 16], strides = [1, 1]} : vector<8x16xf32> to vector<1x16xf32>
    %255 = vector.broadcast %254 : vector<1x16xf32> to vector<8x16xf32>
    %256 = arith.cmpf ogt, %255, %218 : vector<8x16xf32>
    %257 = vector.broadcast %254 : vector<1x16xf32> to vector<8x16xf32>
    %258 = arith.cmpf oeq, %257, %218 : vector<8x16xf32>
    %c3_i32 = arith.constant 3 : i32
    %259 = vector.broadcast %c3_i32 : i32 to vector<8x16xi32>
    %260 = arith.cmpi sgt, %219, %259 : vector<8x16xi32>
    %261 = arith.andi %258, %260 : vector<8x16xi1>
    %262 = arith.ori %256, %261 : vector<8x16xi1>
    %263 = arith.extui %262 : vector<8x16xi1> to vector<8x16xi32>
    %264 = arith.addi %253, %263 : vector<8x16xi32>
    %265 = vector.extract_strided_slice %218 {offsets = [4, 0], sizes = [1, 16], strides = [1, 1]} : vector<8x16xf32> to vector<1x16xf32>
    %266 = vector.broadcast %265 : vector<1x16xf32> to vector<8x16xf32>
    %267 = arith.cmpf ogt, %266, %218 : vector<8x16xf32>
    %268 = vector.broadcast %265 : vector<1x16xf32> to vector<8x16xf32>
    %269 = arith.cmpf oeq, %268, %218 : vector<8x16xf32>
    %c4_i32 = arith.constant 4 : i32
    %270 = vector.broadcast %c4_i32 : i32 to vector<8x16xi32>
    %271 = arith.cmpi sgt, %219, %270 : vector<8x16xi32>
    %272 = arith.andi %269, %271 : vector<8x16xi1>
    %273 = arith.ori %267, %272 : vector<8x16xi1>
    %274 = arith.extui %273 : vector<8x16xi1> to vector<8x16xi32>
    %275 = arith.addi %264, %274 : vector<8x16xi32>
    %276 = vector.extract_strided_slice %218 {offsets = [5, 0], sizes = [1, 16], strides = [1, 1]} : vector<8x16xf32> to vector<1x16xf32>
    %277 = vector.broadcast %276 : vector<1x16xf32> to vector<8x16xf32>
    %278 = arith.cmpf ogt, %277, %218 : vector<8x16xf32>
    %279 = vector.broadcast %276 : vector<1x16xf32> to vector<8x16xf32>
    %280 = arith.cmpf oeq, %279, %218 : vector<8x16xf32>
    %c5_i32 = arith.constant 5 : i32
    %281 = vector.broadcast %c5_i32 : i32 to vector<8x16xi32>
    %282 = arith.cmpi sgt, %219, %281 : vector<8x16xi32>
    %283 = arith.andi %280, %282 : vector<8x16xi1>
    %284 = arith.ori %278, %283 : vector<8x16xi1>
    %285 = arith.extui %284 : vector<8x16xi1> to vector<8x16xi32>
    %286 = arith.addi %275, %285 : vector<8x16xi32>
    %287 = vector.extract_strided_slice %218 {offsets = [6, 0], sizes = [1, 16], strides = [1, 1]} : vector<8x16xf32> to vector<1x16xf32>
    %288 = vector.broadcast %287 : vector<1x16xf32> to vector<8x16xf32>
    %289 = arith.cmpf ogt, %288, %218 : vector<8x16xf32>
    %290 = vector.broadcast %287 : vector<1x16xf32> to vector<8x16xf32>
    %291 = arith.cmpf oeq, %290, %218 : vector<8x16xf32>
    %c6_i32 = arith.constant 6 : i32
    %292 = vector.broadcast %c6_i32 : i32 to vector<8x16xi32>
    %293 = arith.cmpi sgt, %219, %292 : vector<8x16xi32>
    %294 = arith.andi %291, %293 : vector<8x16xi1>
    %295 = arith.ori %289, %294 : vector<8x16xi1>
    %296 = arith.extui %295 : vector<8x16xi1> to vector<8x16xi32>
    %297 = arith.addi %286, %296 : vector<8x16xi32>
    %298 = vector.extract_strided_slice %218 {offsets = [7, 0], sizes = [1, 16], strides = [1, 1]} : vector<8x16xf32> to vector<1x16xf32>
    %299 = vector.broadcast %298 : vector<1x16xf32> to vector<8x16xf32>
    %300 = arith.cmpf ogt, %299, %218 : vector<8x16xf32>
    %301 = vector.broadcast %298 : vector<1x16xf32> to vector<8x16xf32>
    %302 = arith.cmpf oeq, %301, %218 : vector<8x16xf32>
    %c7_i32 = arith.constant 7 : i32
    %303 = vector.broadcast %c7_i32 : i32 to vector<8x16xi32>
    %304 = arith.cmpi sgt, %219, %303 : vector<8x16xi32>
    %305 = arith.andi %302, %304 : vector<8x16xi1>
    %306 = arith.ori %300, %305 : vector<8x16xi1>
    %307 = arith.extui %306 : vector<8x16xi1> to vector<8x16xi32>
    %308 = arith.addi %297, %307 : vector<8x16xi32>
    %cst_94 = arith.constant 0.000000e+00 : f32
    %309 = vector.broadcast %cst_94 : f32 to vector<8x16xf32>
    %310 = vector.extract_strided_slice %308 {offsets = [0, 0], sizes = [1, 16], strides = [1, 1]} : vector<8x16xi32> to vector<1x16xi32>
    %311 = vector.broadcast %310 : vector<1x16xi32> to vector<8x16xi32>
    %312 = arith.cmpi eq, %311, %219 : vector<8x16xi32>
    %313 = vector.extract_strided_slice %218 {offsets = [0, 0], sizes = [1, 16], strides = [1, 1]} : vector<8x16xf32> to vector<1x16xf32>
    %cst_95 = arith.constant 0.000000e+00 : f32
    %314 = vector.shape_cast %313 : vector<1x16xf32> to vector<1x16xf32>
    %315 = vector.broadcast %314 : vector<1x16xf32> to vector<8x16xf32>
    %316 = vector.broadcast %cst_95 : f32 to vector<8x16xf32>
    %317 = arith.select %312, %315, %316 : vector<8x16xi1>, vector<8x16xf32>
    %318 = arith.addf %309, %317 : vector<8x16xf32>
    %319 = vector.extract_strided_slice %308 {offsets = [1, 0], sizes = [1, 16], strides = [1, 1]} : vector<8x16xi32> to vector<1x16xi32>
    %320 = vector.broadcast %319 : vector<1x16xi32> to vector<8x16xi32>
    %321 = arith.cmpi eq, %320, %219 : vector<8x16xi32>
    %322 = vector.extract_strided_slice %218 {offsets = [1, 0], sizes = [1, 16], strides = [1, 1]} : vector<8x16xf32> to vector<1x16xf32>
    %cst_96 = arith.constant 0.000000e+00 : f32
    %323 = vector.shape_cast %322 : vector<1x16xf32> to vector<1x16xf32>
    %324 = vector.broadcast %323 : vector<1x16xf32> to vector<8x16xf32>
    %325 = vector.broadcast %cst_96 : f32 to vector<8x16xf32>
    %326 = arith.select %321, %324, %325 : vector<8x16xi1>, vector<8x16xf32>
    %327 = arith.addf %318, %326 : vector<8x16xf32>
    %328 = vector.extract_strided_slice %308 {offsets = [2, 0], sizes = [1, 16], strides = [1, 1]} : vector<8x16xi32> to vector<1x16xi32>
    %329 = vector.broadcast %328 : vector<1x16xi32> to vector<8x16xi32>
    %330 = arith.cmpi eq, %329, %219 : vector<8x16xi32>
    %331 = vector.extract_strided_slice %218 {offsets = [2, 0], sizes = [1, 16], strides = [1, 1]} : vector<8x16xf32> to vector<1x16xf32>
    %cst_97 = arith.constant 0.000000e+00 : f32
    %332 = vector.shape_cast %331 : vector<1x16xf32> to vector<1x16xf32>
    %333 = vector.broadcast %332 : vector<1x16xf32> to vector<8x16xf32>
    %334 = vector.broadcast %cst_97 : f32 to vector<8x16xf32>
    %335 = arith.select %330, %333, %334 : vector<8x16xi1>, vector<8x16xf32>
    %336 = arith.addf %327, %335 : vector<8x16xf32>
    %337 = vector.extract_strided_slice %308 {offsets = [3, 0], sizes = [1, 16], strides = [1, 1]} : vector<8x16xi32> to vector<1x16xi32>
    %338 = vector.broadcast %337 : vector<1x16xi32> to vector<8x16xi32>
    %339 = arith.cmpi eq, %338, %219 : vector<8x16xi32>
    %340 = vector.extract_strided_slice %218 {offsets = [3, 0], sizes = [1, 16], strides = [1, 1]} : vector<8x16xf32> to vector<1x16xf32>
    %cst_98 = arith.constant 0.000000e+00 : f32
    %341 = vector.shape_cast %340 : vector<1x16xf32> to vector<1x16xf32>
    %342 = vector.broadcast %341 : vector<1x16xf32> to vector<8x16xf32>
    %343 = vector.broadcast %cst_98 : f32 to vector<8x16xf32>
    %344 = arith.select %339, %342, %343 : vector<8x16xi1>, vector<8x16xf32>
    %345 = arith.addf %336, %344 : vector<8x16xf32>
    %346 = vector.extract_strided_slice %308 {offsets = [4, 0], sizes = [1, 16], strides = [1, 1]} : vector<8x16xi32> to vector<1x16xi32>
    %347 = vector.broadcast %346 : vector<1x16xi32> to vector<8x16xi32>
    %348 = arith.cmpi eq, %347, %219 : vector<8x16xi32>
    %349 = vector.extract_strided_slice %218 {offsets = [4, 0], sizes = [1, 16], strides = [1, 1]} : vector<8x16xf32> to vector<1x16xf32>
    %cst_99 = arith.constant 0.000000e+00 : f32
    %350 = vector.shape_cast %349 : vector<1x16xf32> to vector<1x16xf32>
    %351 = vector.broadcast %350 : vector<1x16xf32> to vector<8x16xf32>
    %352 = vector.broadcast %cst_99 : f32 to vector<8x16xf32>
    %353 = arith.select %348, %351, %352 : vector<8x16xi1>, vector<8x16xf32>
    %354 = arith.addf %345, %353 : vector<8x16xf32>
    %355 = vector.extract_strided_slice %308 {offsets = [5, 0], sizes = [1, 16], strides = [1, 1]} : vector<8x16xi32> to vector<1x16xi32>
    %356 = vector.broadcast %355 : vector<1x16xi32> to vector<8x16xi32>
    %357 = arith.cmpi eq, %356, %219 : vector<8x16xi32>
    %358 = vector.extract_strided_slice %218 {offsets = [5, 0], sizes = [1, 16], strides = [1, 1]} : vector<8x16xf32> to vector<1x16xf32>
    %cst_100 = arith.constant 0.000000e+00 : f32
    %359 = vector.shape_cast %358 : vector<1x16xf32> to vector<1x16xf32>
    %360 = vector.broadcast %359 : vector<1x16xf32> to vector<8x16xf32>
    %361 = vector.broadcast %cst_100 : f32 to vector<8x16xf32>
    %362 = arith.select %357, %360, %361 : vector<8x16xi1>, vector<8x16xf32>
    %363 = arith.addf %354, %362 : vector<8x16xf32>
    %364 = vector.extract_strided_slice %308 {offsets = [6, 0], sizes = [1, 16], strides = [1, 1]} : vector<8x16xi32> to vector<1x16xi32>
    %365 = vector.broadcast %364 : vector<1x16xi32> to vector<8x16xi32>
    %366 = arith.cmpi eq, %365, %219 : vector<8x16xi32>
    %367 = vector.extract_strided_slice %218 {offsets = [6, 0], sizes = [1, 16], strides = [1, 1]} : vector<8x16xf32> to vector<1x16xf32>
    %cst_101 = arith.constant 0.000000e+00 : f32
    %368 = vector.shape_cast %367 : vector<1x16xf32> to vector<1x16xf32>
    %369 = vector.broadcast %368 : vector<1x16xf32> to vector<8x16xf32>
    %370 = vector.broadcast %cst_101 : f32 to vector<8x16xf32>
    %371 = arith.select %366, %369, %370 : vector<8x16xi1>, vector<8x16xf32>
    %372 = arith.addf %363, %371 : vector<8x16xf32>
    %373 = vector.extract_strided_slice %308 {offsets = [7, 0], sizes = [1, 16], strides = [1, 1]} : vector<8x16xi32> to vector<1x16xi32>
    %374 = vector.broadcast %373 : vector<1x16xi32> to vector<8x16xi32>
    %375 = arith.cmpi eq, %374, %219 : vector<8x16xi32>
    %376 = vector.extract_strided_slice %218 {offsets = [7, 0], sizes = [1, 16], strides = [1, 1]} : vector<8x16xf32> to vector<1x16xf32>
    %cst_102 = arith.constant 0.000000e+00 : f32
    %377 = vector.shape_cast %376 : vector<1x16xf32> to vector<1x16xf32>
    %378 = vector.broadcast %377 : vector<1x16xf32> to vector<8x16xf32>
    %379 = vector.broadcast %cst_102 : f32 to vector<8x16xf32>
    %380 = arith.select %375, %378, %379 : vector<8x16xi1>, vector<8x16xf32>
    %381 = arith.addf %372, %380 : vector<8x16xf32>
    %382 = vector.extract_strided_slice %381 {offsets = [0, 0], sizes = [1, 16], strides = [1, 1]} : vector<8x16xf32> to vector<1x16xf32>
    %383 = vector.broadcast %382 : vector<1x16xf32> to vector<8x16xf32>
    %384 = arith.subf %218, %383 : vector<8x16xf32>
    %385 = math.absf %384 : vector<8x16xf32>
    %cst_103 = arith.constant 0.000000e+00 : f32
    %386 = vector.broadcast %cst_103 : f32 to vector<8x16xf32>
    %387 = arith.subf %386, %385 : vector<8x16xf32>
    %388 = math.exp %387 : vector<8x16xf32>
    %cst_104 = arith.constant dense<0.000000e+00> : vector<16xf32>
    %389 = vector.multi_reduction <add>, %388, %cst_104 [0] : vector<8x16xf32> to vector<16xf32>
    %390 = vector.shape_cast %389 : vector<16xf32> to vector<1x16xf32>
    %cst_105 = arith.constant 1.000000e+00 : f32
    %391 = vector.broadcast %cst_105 : f32 to vector<1x16xf32>
    %392 = arith.divf %391, %390 : vector<1x16xf32>
    %393 = vector.broadcast %392 : vector<1x16xf32> to vector<8x16xf32>
    %394 = arith.mulf %388, %393 : vector<8x16xf32>
    %c0_106 = arith.constant 0 : index
    %c0_107 = arith.constant 0 : index
    %c0_108 = arith.constant 0 : index
    %c0_109 = arith.constant 0 : index
    %395 = vector.load %arg5[%c0_106, %c0_107, %c0_108, %c0_109] : memref<1x8x8x16xf32, #tpu.memory_space<vmem>>, vector<1x1x8x16xf32>
    %396 = vector.shape_cast %395 : vector<1x1x8x16xf32> to vector<8x16xf32>
    %397 = vector.shape_cast %394 : vector<8x16xf32> to vector<1x1x8x16xf32>
    tpu.vector_store %arg5[%c0_106, %c0_107, %c0_108, %c0_109], %397 {strides = array<i32>} : memref<1x8x8x16xf32, #tpu.memory_space<vmem>>, vector<1x1x8x16xf32>,
    %398 = vector.extract_strided_slice %381 {offsets = [1, 0], sizes = [1, 16], strides = [1, 1]} : vector<8x16xf32> to vector<1x16xf32>
    %399 = vector.broadcast %398 : vector<1x16xf32> to vector<8x16xf32>
    %400 = arith.subf %218, %399 : vector<8x16xf32>
    %401 = math.absf %400 : vector<8x16xf32>
    %cst_110 = arith.constant 0.000000e+00 : f32
    %402 = vector.broadcast %cst_110 : f32 to vector<8x16xf32>
    %403 = arith.subf %402, %401 : vector<8x16xf32>
    %404 = math.exp %403 : vector<8x16xf32>
    %cst_111 = arith.constant dense<0.000000e+00> : vector<16xf32>
    %405 = vector.multi_reduction <add>, %404, %cst_111 [0] : vector<8x16xf32> to vector<16xf32>
    %406 = vector.shape_cast %405 : vector<16xf32> to vector<1x16xf32>
    %cst_112 = arith.constant 1.000000e+00 : f32
    %407 = vector.broadcast %cst_112 : f32 to vector<1x16xf32>
    %408 = arith.divf %407, %406 : vector<1x16xf32>
    %409 = vector.broadcast %408 : vector<1x16xf32> to vector<8x16xf32>
    %410 = arith.mulf %404, %409 : vector<8x16xf32>
    %c0_113 = arith.constant 0 : index
    %c1_114 = arith.constant 1 : index
    %c0_115 = arith.constant 0 : index
    %c0_116 = arith.constant 0 : index
    %411 = vector.load %arg5[%c0_113, %c1_114, %c0_115, %c0_116] : memref<1x8x8x16xf32, #tpu.memory_space<vmem>>, vector<1x1x8x16xf32>
    %412 = vector.shape_cast %411 : vector<1x1x8x16xf32> to vector<8x16xf32>
    %413 = vector.shape_cast %410 : vector<8x16xf32> to vector<1x1x8x16xf32>
    tpu.vector_store %arg5[%c0_113, %c1_114, %c0_115, %c0_116], %413 {strides = array<i32>} : memref<1x8x8x16xf32, #tpu.memory_space<vmem>>, vector<1x1x8x16xf32>,
    %414 = vector.extract_strided_slice %381 {offsets = [2, 0], sizes = [1, 16], strides = [1, 1]} : vector<8x16xf32> to vector<1x16xf32>
    %415 = vector.broadcast %414 : vector<1x16xf32> to vector<8x16xf32>
    %416 = arith.subf %218, %415 : vector<8x16xf32>
    %417 = math.absf %416 : vector<8x16xf32>
    %cst_117 = arith.constant 0.000000e+00 : f32
    %418 = vector.broadcast %cst_117 : f32 to vector<8x16xf32>
    %419 = arith.subf %418, %417 : vector<8x16xf32>
    %420 = math.exp %419 : vector<8x16xf32>
    %cst_118 = arith.constant dense<0.000000e+00> : vector<16xf32>
    %421 = vector.multi_reduction <add>, %420, %cst_118 [0] : vector<8x16xf32> to vector<16xf32>
    %422 = vector.shape_cast %421 : vector<16xf32> to vector<1x16xf32>
    %cst_119 = arith.constant 1.000000e+00 : f32
    %423 = vector.broadcast %cst_119 : f32 to vector<1x16xf32>
    %424 = arith.divf %423, %422 : vector<1x16xf32>
    %425 = vector.broadcast %424 : vector<1x16xf32> to vector<8x16xf32>
    %426 = arith.mulf %420, %425 : vector<8x16xf32>
    %c0_120 = arith.constant 0 : index
    %c2_121 = arith.constant 2 : index
    %c0_122 = arith.constant 0 : index
    %c0_123 = arith.constant 0 : index
    %427 = vector.load %arg5[%c0_120, %c2_121, %c0_122, %c0_123] : memref<1x8x8x16xf32, #tpu.memory_space<vmem>>, vector<1x1x8x16xf32>
    %428 = vector.shape_cast %427 : vector<1x1x8x16xf32> to vector<8x16xf32>
    %429 = vector.shape_cast %426 : vector<8x16xf32> to vector<1x1x8x16xf32>
    tpu.vector_store %arg5[%c0_120, %c2_121, %c0_122, %c0_123], %429 {strides = array<i32>} : memref<1x8x8x16xf32, #tpu.memory_space<vmem>>, vector<1x1x8x16xf32>,
    %430 = vector.extract_strided_slice %381 {offsets = [3, 0], sizes = [1, 16], strides = [1, 1]} : vector<8x16xf32> to vector<1x16xf32>
    %431 = vector.broadcast %430 : vector<1x16xf32> to vector<8x16xf32>
    %432 = arith.subf %218, %431 : vector<8x16xf32>
    %433 = math.absf %432 : vector<8x16xf32>
    %cst_124 = arith.constant 0.000000e+00 : f32
    %434 = vector.broadcast %cst_124 : f32 to vector<8x16xf32>
    %435 = arith.subf %434, %433 : vector<8x16xf32>
    %436 = math.exp %435 : vector<8x16xf32>
    %cst_125 = arith.constant dense<0.000000e+00> : vector<16xf32>
    %437 = vector.multi_reduction <add>, %436, %cst_125 [0] : vector<8x16xf32> to vector<16xf32>
    %438 = vector.shape_cast %437 : vector<16xf32> to vector<1x16xf32>
    %cst_126 = arith.constant 1.000000e+00 : f32
    %439 = vector.broadcast %cst_126 : f32 to vector<1x16xf32>
    %440 = arith.divf %439, %438 : vector<1x16xf32>
    %441 = vector.broadcast %440 : vector<1x16xf32> to vector<8x16xf32>
    %442 = arith.mulf %436, %441 : vector<8x16xf32>
    %c0_127 = arith.constant 0 : index
    %c3_128 = arith.constant 3 : index
    %c0_129 = arith.constant 0 : index
    %c0_130 = arith.constant 0 : index
    %443 = vector.load %arg5[%c0_127, %c3_128, %c0_129, %c0_130] : memref<1x8x8x16xf32, #tpu.memory_space<vmem>>, vector<1x1x8x16xf32>
    %444 = vector.shape_cast %443 : vector<1x1x8x16xf32> to vector<8x16xf32>
    %445 = vector.shape_cast %442 : vector<8x16xf32> to vector<1x1x8x16xf32>
    tpu.vector_store %arg5[%c0_127, %c3_128, %c0_129, %c0_130], %445 {strides = array<i32>} : memref<1x8x8x16xf32, #tpu.memory_space<vmem>>, vector<1x1x8x16xf32>,
    %446 = vector.extract_strided_slice %381 {offsets = [4, 0], sizes = [1, 16], strides = [1, 1]} : vector<8x16xf32> to vector<1x16xf32>
    %447 = vector.broadcast %446 : vector<1x16xf32> to vector<8x16xf32>
    %448 = arith.subf %218, %447 : vector<8x16xf32>
    %449 = math.absf %448 : vector<8x16xf32>
    %cst_131 = arith.constant 0.000000e+00 : f32
    %450 = vector.broadcast %cst_131 : f32 to vector<8x16xf32>
    %451 = arith.subf %450, %449 : vector<8x16xf32>
    %452 = math.exp %451 : vector<8x16xf32>
    %cst_132 = arith.constant dense<0.000000e+00> : vector<16xf32>
    %453 = vector.multi_reduction <add>, %452, %cst_132 [0] : vector<8x16xf32> to vector<16xf32>
    %454 = vector.shape_cast %453 : vector<16xf32> to vector<1x16xf32>
    %cst_133 = arith.constant 1.000000e+00 : f32
    %455 = vector.broadcast %cst_133 : f32 to vector<1x16xf32>
    %456 = arith.divf %455, %454 : vector<1x16xf32>
    %457 = vector.broadcast %456 : vector<1x16xf32> to vector<8x16xf32>
    %458 = arith.mulf %452, %457 : vector<8x16xf32>
    %c0_134 = arith.constant 0 : index
    %c4_135 = arith.constant 4 : index
    %c0_136 = arith.constant 0 : index
    %c0_137 = arith.constant 0 : index
    %459 = vector.load %arg5[%c0_134, %c4_135, %c0_136, %c0_137] : memref<1x8x8x16xf32, #tpu.memory_space<vmem>>, vector<1x1x8x16xf32>
    %460 = vector.shape_cast %459 : vector<1x1x8x16xf32> to vector<8x16xf32>
    %461 = vector.shape_cast %458 : vector<8x16xf32> to vector<1x1x8x16xf32>
    tpu.vector_store %arg5[%c0_134, %c4_135, %c0_136, %c0_137], %461 {strides = array<i32>} : memref<1x8x8x16xf32, #tpu.memory_space<vmem>>, vector<1x1x8x16xf32>,
    %462 = vector.extract_strided_slice %381 {offsets = [5, 0], sizes = [1, 16], strides = [1, 1]} : vector<8x16xf32> to vector<1x16xf32>
    %463 = vector.broadcast %462 : vector<1x16xf32> to vector<8x16xf32>
    %464 = arith.subf %218, %463 : vector<8x16xf32>
    %465 = math.absf %464 : vector<8x16xf32>
    %cst_138 = arith.constant 0.000000e+00 : f32
    %466 = vector.broadcast %cst_138 : f32 to vector<8x16xf32>
    %467 = arith.subf %466, %465 : vector<8x16xf32>
    %468 = math.exp %467 : vector<8x16xf32>
    %cst_139 = arith.constant dense<0.000000e+00> : vector<16xf32>
    %469 = vector.multi_reduction <add>, %468, %cst_139 [0] : vector<8x16xf32> to vector<16xf32>
    %470 = vector.shape_cast %469 : vector<16xf32> to vector<1x16xf32>
    %cst_140 = arith.constant 1.000000e+00 : f32
    %471 = vector.broadcast %cst_140 : f32 to vector<1x16xf32>
    %472 = arith.divf %471, %470 : vector<1x16xf32>
    %473 = vector.broadcast %472 : vector<1x16xf32> to vector<8x16xf32>
    %474 = arith.mulf %468, %473 : vector<8x16xf32>
    %c0_141 = arith.constant 0 : index
    %c5_142 = arith.constant 5 : index
    %c0_143 = arith.constant 0 : index
    %c0_144 = arith.constant 0 : index
    %475 = vector.load %arg5[%c0_141, %c5_142, %c0_143, %c0_144] : memref<1x8x8x16xf32, #tpu.memory_space<vmem>>, vector<1x1x8x16xf32>
    %476 = vector.shape_cast %475 : vector<1x1x8x16xf32> to vector<8x16xf32>
    %477 = vector.shape_cast %474 : vector<8x16xf32> to vector<1x1x8x16xf32>
    tpu.vector_store %arg5[%c0_141, %c5_142, %c0_143, %c0_144], %477 {strides = array<i32>} : memref<1x8x8x16xf32, #tpu.memory_space<vmem>>, vector<1x1x8x16xf32>,
    %478 = vector.extract_strided_slice %381 {offsets = [6, 0], sizes = [1, 16], strides = [1, 1]} : vector<8x16xf32> to vector<1x16xf32>
    %479 = vector.broadcast %478 : vector<1x16xf32> to vector<8x16xf32>
    %480 = arith.subf %218, %479 : vector<8x16xf32>
    %481 = math.absf %480 : vector<8x16xf32>
    %cst_145 = arith.constant 0.000000e+00 : f32
    %482 = vector.broadcast %cst_145 : f32 to vector<8x16xf32>
    %483 = arith.subf %482, %481 : vector<8x16xf32>
    %484 = math.exp %483 : vector<8x16xf32>
    %cst_146 = arith.constant dense<0.000000e+00> : vector<16xf32>
    %485 = vector.multi_reduction <add>, %484, %cst_146 [0] : vector<8x16xf32> to vector<16xf32>
    %486 = vector.shape_cast %485 : vector<16xf32> to vector<1x16xf32>
    %cst_147 = arith.constant 1.000000e+00 : f32
    %487 = vector.broadcast %cst_147 : f32 to vector<1x16xf32>
    %488 = arith.divf %487, %486 : vector<1x16xf32>
    %489 = vector.broadcast %488 : vector<1x16xf32> to vector<8x16xf32>
    %490 = arith.mulf %484, %489 : vector<8x16xf32>
    %c0_148 = arith.constant 0 : index
    %c6_149 = arith.constant 6 : index
    %c0_150 = arith.constant 0 : index
    %c0_151 = arith.constant 0 : index
    %491 = vector.load %arg5[%c0_148, %c6_149, %c0_150, %c0_151] : memref<1x8x8x16xf32, #tpu.memory_space<vmem>>, vector<1x1x8x16xf32>
    %492 = vector.shape_cast %491 : vector<1x1x8x16xf32> to vector<8x16xf32>
    %493 = vector.shape_cast %490 : vector<8x16xf32> to vector<1x1x8x16xf32>
    tpu.vector_store %arg5[%c0_148, %c6_149, %c0_150, %c0_151], %493 {strides = array<i32>} : memref<1x8x8x16xf32, #tpu.memory_space<vmem>>, vector<1x1x8x16xf32>,
    %494 = vector.extract_strided_slice %381 {offsets = [7, 0], sizes = [1, 16], strides = [1, 1]} : vector<8x16xf32> to vector<1x16xf32>
    %495 = vector.broadcast %494 : vector<1x16xf32> to vector<8x16xf32>
    %496 = arith.subf %218, %495 : vector<8x16xf32>
    %497 = math.absf %496 : vector<8x16xf32>
    %cst_152 = arith.constant 0.000000e+00 : f32
    %498 = vector.broadcast %cst_152 : f32 to vector<8x16xf32>
    %499 = arith.subf %498, %497 : vector<8x16xf32>
    %500 = math.exp %499 : vector<8x16xf32>
    %cst_153 = arith.constant dense<0.000000e+00> : vector<16xf32>
    %501 = vector.multi_reduction <add>, %500, %cst_153 [0] : vector<8x16xf32> to vector<16xf32>
    %502 = vector.shape_cast %501 : vector<16xf32> to vector<1x16xf32>
    %cst_154 = arith.constant 1.000000e+00 : f32
    %503 = vector.broadcast %cst_154 : f32 to vector<1x16xf32>
    %504 = arith.divf %503, %502 : vector<1x16xf32>
    %505 = vector.broadcast %504 : vector<1x16xf32> to vector<8x16xf32>
    %506 = arith.mulf %500, %505 : vector<8x16xf32>
    %c0_155 = arith.constant 0 : index
    %c7_156 = arith.constant 7 : index
    %c0_157 = arith.constant 0 : index
    %c0_158 = arith.constant 0 : index
    %507 = vector.load %arg5[%c0_155, %c7_156, %c0_157, %c0_158] : memref<1x8x8x16xf32, #tpu.memory_space<vmem>>, vector<1x1x8x16xf32>
    %508 = vector.shape_cast %507 : vector<1x1x8x16xf32> to vector<8x16xf32>
    %509 = vector.shape_cast %506 : vector<8x16xf32> to vector<1x1x8x16xf32>
    tpu.vector_store %arg5[%c0_155, %c7_156, %c0_157, %c0_158], %509 {strides = array<i32>} : memref<1x8x8x16xf32, #tpu.memory_space<vmem>>, vector<1x1x8x16xf32>,
    return
  }
  func.func @transform_0(%arg0: i32) -> (i32, i32, i32, i32) {
    %c0_i32 = arith.constant 0 : i32
    %c0_i32_0 = arith.constant 0 : i32
    %c0_i32_1 = arith.constant 0 : i32
    %c0_i32_2 = arith.constant 0 : i32
    return %arg0, %c0_i32, %c0_i32_0, %c0_i32_1 : i32, i32, i32, i32
  }
  func.func @transform_1(%arg0: i32) -> (i32, i32, i32) {
    %c0_i32 = arith.constant 0 : i32
    %c0_i32_0 = arith.constant 0 : i32
    %c0_i32_1 = arith.constant 0 : i32
    return %arg0, %c0_i32, %c0_i32_0 : i32, i32, i32
  }
  func.func @transform_2(%arg0: i32) -> (i32, i32) {
    %c0_i32 = arith.constant 0 : i32
    %c0_i32_0 = arith.constant 0 : i32
    %c0_i32_1 = arith.constant 0 : i32
    return %c0_i32, %c0_i32_0 : i32, i32
  }
  func.func @transform_3(%arg0: i32) -> i32 {
    %c0_i32 = arith.constant 0 : i32
    %c0_i32_0 = arith.constant 0 : i32
    return %c0_i32 : i32
  }
  func.func @transform_4(%arg0: i32) -> (i32, i32, i32, i32) {
    %c0_i32 = arith.constant 0 : i32
    %c0_i32_0 = arith.constant 0 : i32
    %c0_i32_1 = arith.constant 0 : i32
    %c0_i32_2 = arith.constant 0 : i32
    return %arg0, %c0_i32, %c0_i32_0, %c0_i32_1 : i32, i32, i32, i32
  }
}

</mosaic_0001>

<bundles_post_ra>
// kernel: tpu_custom_call.1
= control target key start
LH: loop header
LB: loop body
LE: loop exit
PB: predicated region body
PF: predicated region fallthrough
CT: control target
= control target key end

     0   :  { %9 = vsyncpa [#allocation3], 0  ;;  %s1093_s0 = inlined_call_operand.hbm [shape: f32[1,2,8,16], index: 0, kind: input, shape index: {}]   ;;  %s1094_s1 = inlined_call_operand.hbm [shape: f32[1,8,16], index: 1, kind: input, shape index: {}]   ;;  %s1095_s2 = inlined_call_operand.vmem [shape: f32[2,16], index: 2, kind: input, shape index: {}]   ;;  %s1096_s3 = inlined_call_operand.vmem [shape: f32[16], index: 3, kind: input, shape index: {}]   ;;  %s1097_s4 = inlined_call_operand.hbm [shape: f32[1,8,8,16], index: 4, kind: output, shape index: {}]  }
   0x1   :  { %10 = vsyncpa [#allocation7], 0 }
   0x2   :  { %11 = vsyncpa [#allocation5], 0 }
   0x3   :  { %12 = vsyncpa [#allocation10], 0 }
   0x4   :  { %13 = vsyncpa [#allocation4], 0  ;;  %s780_s15 = smov [#allocation2]  }
   0x5   :  { %s19_s16 = sshll.u32 %s780_s15, 4  ;;  %s20_s16 = int_to_ptr.vmem [resolvable:$true] %s19_s16 }
   0x6   :  { %s694_s17 = scalar_lea.vmem %s20_s16, 256  ;;  %p699_p1 = scmp.lt.s32.totalorder %s20_s16, %s20_s16 }
   0x7   :  { %p695_p0 = scmp.ne.s32.totalorder %s20_s16, %s694_s17  ;;  %p700_p2 = scmp.lt.s32.totalorder %s694_s17, %s694_s17 }
   0x9   :  { %p701_p3 = por %p700_p2, %p699_p1 }
   0xb   :  { %p702_p4 = pnand %p701_p3, %p695_p0 }
   0xd   :  { %705 = shalt.err (!%p702_p4)
}
   0xe   :  { %s781_s18 = smov 128   ;;  %s782_s19 = smov 8  }
   0xf   :  { %25 = dma.hbm_to_vmem [thread:$0]  %s1093_s0, 256, %s20_s16, [#allocation3], %s781_s18, %s781_s18, %s782_s19  }
  0x10   :  { %s783_s22 = smov [#allocation6]   ;;  %s42_s26 = sshll.u32 %s1095_s2, 4  ;;  %s43_s26 = int_to_ptr.vmem [resolvable:$true] %s42_s26 }
  0x11   :  { %s32_s23 = sshll.u32 %s783_s22, 4  ;;  %s33_s23 = int_to_ptr.vmem [resolvable:$true] %s32_s23 }
  0x12   :  { %s714_s27 = scalar_lea.vmem %s33_s23, 128  ;;  %p719_p6 = scmp.lt.s32.totalorder %s33_s23, %s33_s23 }
  0x13   :  { %p715_p5 = scmp.ne.s32.totalorder %s33_s23, %s714_s27  ;;  %p720_p7 = scmp.lt.s32.totalorder %s714_s27, %s714_s27 }
  0x15   :  { %p721_p8 = por %p720_p7, %p719_p6 }
  0x17   :  { %p722_p9 = pnand %p721_p8, %p715_p5 }
  0x19   :  { %725 = shalt.err (!%p722_p9)
}
  0x1a   :  { %35 = dma.hbm_to_vmem [thread:$0]  %s1094_s1, 128, %s33_s23, [#allocation7]  }
  0x1b   :  { %s52_s5 = sshll.u32 %s1096_s3, 4  ;;  %s726_s6 = scalar_lea.vmem %s43_s26, 32  ;;  %s53_s5 = int_to_ptr.vmem [resolvable:$true] %s52_s5 }
  0x1c   :  { %p727_p10 = scmp.ne.s32.totalorder %s43_s26, %s726_s6  ;;  %p731_p11 = scmp.lt.s32.totalorder %s43_s26, %s43_s26 }
  0x1d   :  { %p732_p12 = scmp.lt.s32.totalorder %s726_s6, %s726_s6 }
  0x1f   :  { %p733_p13 = por %p732_p12, %p731_p11 }
  0x21   :  { %p734_p0 = pnand %p733_p13, %p727_p10 }
  0x23   :  { %737 = shalt.err (!%p734_p0)
}
  0x24   :  { %s784_s2 = smov [#allocation8]   ;;  %s738_s7 = scalar_lea.vmem %s53_s5, 16 }
  0x25   :  { %45 = dma.vmem_to_smem %s43_s26, 32, %s784_s2, [#allocation5]  }
  0x26   :  { %p739_p1 = scmp.ne.s32.totalorder %s53_s5, %s738_s7  ;;  %p743_p2 = scmp.lt.s32.totalorder %s53_s5, %s53_s5 }
  0x27   :  { %p744_p3 = scmp.lt.s32.totalorder %s738_s7, %s738_s7 }
  0x29   :  { %p745_p4 = por %p744_p3, %p743_p2 }
  0x2b   :  { %p746_p5 = pnand %p745_p4, %p739_p1 }
  0x2d   :  { %749 = shalt.err (!%p746_p5)
}
  0x2e   :  { %s785_s1 = smov [#allocation9]  }
  0x2f   :  { %55 = dma.vmem_to_smem %s53_s5, 16, %s785_s1, [#allocation10]  }
  0x30   :  { %770 = dma.done.wait [#allocation3], 256  }
  0x31   :  { %771 = vsyncadd [#allocation3], 4294967040 }
  0x32   :  { %772 = dma.done.wait [#allocation7], 128  }
  0x33   :  { %773 = vsyncadd [#allocation7], 4294967168 }
  0x34   :  { %774 = dma.done.wait [#allocation5], 32  }
  0x35   :  { %775 = vsyncadd [#allocation5], 4294967264 }
  0x36   :  { %776 = dma.done.wait [#allocation10], 16  }
  0x37   :  { %777 = vsyncadd [#allocation10], 4294967280 }
  0x38   :  { %68 = sfence }
  0x39   :  { %s72_s3 = sld [smem:[#allocation8]]  ;;  %v830_v0 = vld [vmem:[#allocation2] sm:$0xff]  ;;  %v832_v1 = vld [vmem:[#allocation2 + $0x8] sm:$0xff] }
  0x3a   :  { %s600_s8 = sld [smem:[#allocation8 + $0x80]] }
  0x3b   :  { %s828_s9 = sld [smem:[#allocation9]] }
  0x3c   :  { %s601_s10 = sld [smem:[#allocation8 + $0x1]] }
  0x3d   :  { %s602_s11 = sld [smem:[#allocation8 + $0x81]] }
  0x3e   :  { %s834_s12 = sld [smem:[#allocation9 + $0x1]] }
  0x3f   :  { %v73_v2 = vstv %s72_s3  ;;  %s604_s13 = sld [smem:[#allocation8 + $0x2]] }
  0x40   :  { %v74_v3 = vmul.f32 %v73_v2, %v830_v0  ;;  %v76_v4 = vstv %s600_s8  ;;  %s605_s14 = sld [smem:[#allocation8 + $0x82]] }
  0x41   :  { %v77_v5 = vmul.f32 %v76_v4, %v832_v1  ;;  %s838_s15 = sld [smem:[#allocation9 + $0x2]]  ;;  %v81_v12 = vstv %s828_s9 }
  0x42   :  { %v85_v6 = vstv %s601_s10  ;;  %s607_s16 = sld [smem:[#allocation8 + $0x3]] }
  0x43   :  { %v78_v7 = vadd.f32 %v77_v5, %v74_v3  ;;  %v86_v8 = vmul.f32 %v85_v6, %v830_v0  ;;  %v88_v9 = vstv %s602_s11  ;;  %s608_s17 = sld [smem:[#allocation8 + $0x83]] }
  0x44   :  { %v89_v10 = vmul.f32 %v88_v9, %v832_v1  ;;  %s842_s20 = sld [smem:[#allocation9 + $0x3]]  ;;  %v93_v17 = vstv %s834_s12 }
  0x45   :  { %v79_v11 = vmax.f32 %v78_v7, 0.0  ;;  %v97_v13 = vstv %s604_s13  ;;  %s610_s21 = sld [smem:[#allocation8 + $0x4]] }
  0x46   :  { %v90_v14 = vadd.f32 %v89_v10, %v86_v8  ;;  %v98_v15 = vmul.f32 %v97_v13, %v830_v0  ;;  %v100_v16 = vstv %s605_s14  ;;  %s611_s22 = sld [smem:[#allocation8 + $0x84]] }
  0x47   :  { %v101_v18 = vmul.f32 %v100_v16, %v832_v1  ;;  %s848_s23 = sld [smem:[#allocation9 + $0x4]]  ;;  %v82_v19 = vmul.f32 %v81_v12, %v79_v11  ;;  %v105_v26 = vstv %s838_s15 }
  0x48   :  { %v91_v20 = vmax.f32 %v90_v14, 0.0  ;;  %v109_v21 = vstv %s607_s16  ;;  %s613_s24 = sld [smem:[#allocation8 + $0x5]] }
  0x49   :  { %v102_v22 = vadd.f32 %v101_v18, %v98_v15  ;;  %v110_v23 = vmul.f32 %v109_v21, %v830_v0  ;;  %v112_v24 = vstv %s608_s17  ;;  %s614_s25 = sld [smem:[#allocation8 + $0x85]] }
  0x4a   :  { %v94_v25 = vmul.f32 %v93_v17, %v91_v20  ;;  %v113_v27 = vmul.f32 %v112_v24, %v832_v1  ;;  %s853_s26 = sld [smem:[#allocation9 + $0x5]]  ;;  %v117_v35 = vstv %s842_s20 }
  0x4b   :  { %v103_v28 = vmax.f32 %v102_v22, 0.0  ;;  %v121_v29 = vstv %s610_s21  ;;  %s616_s27 = sld [smem:[#allocation8 + $0x6]] }
  0x4c   :  { %v95_v30 = vadd.f32 %v94_v25, %v82_v19  ;;  %v114_v31 = vadd.f32 %v113_v27, %v110_v23  ;;  %v122_v32 = vmul.f32 %v121_v29, %v830_v0  ;;  %v124_v33 = vstv %s611_s22  ;;  %s617_s28 = sld [smem:[#allocation8 + $0x86]] }
  0x4d   :  { %v106_v34 = vmul.f32 %v105_v26, %v103_v28  ;;  %v125_v36 = vmul.f32 %v124_v33, %v832_v1  ;;  %s858_s29 = sld [smem:[#allocation9 + $0x6]]  ;;  %v129_v44 = vstv %s848_s23 }
  0x4e   :  { %v115_v37 = vmax.f32 %v114_v31, 0.0  ;;  %v133_v38 = vstv %s613_s24  ;;  %s619_s0 = sld [smem:[#allocation8 + $0x7]] }
  0x4f   :  { %v107_v39 = vadd.f32 %v106_v34, %v95_v30  ;;  %v126_v40 = vadd.f32 %v125_v36, %v122_v32  ;;  %v134_v41 = vmul.f32 %v133_v38, %v830_v0  ;;  %v136_v42 = vstv %s614_s25  ;;  %s620_s30 = sld [smem:[#allocation8 + $0x87]] }
  0x50   :  { %v118_v43 = vmul.f32 %v117_v35, %v115_v37  ;;  %v137_v45 = vmul.f32 %v136_v42, %v832_v1  ;;  %s863_s5 = sld [smem:[#allocation9 + $0x7]]  ;;  %v141_v53 = vstv %s853_s26 }
  0x51   :  { %v127_v46 = vmax.f32 %v126_v40, 0.0  ;;  %v145_v47 = vstv %s616_s27  ;;  %s622_s6 = sld [smem:[#allocation8 + $0x8]] }
  0x52   :  { %v119_v48 = vadd.f32 %v118_v43, %v107_v39  ;;  %v138_v49 = vadd.f32 %v137_v45, %v134_v41  ;;  %v146_v50 = vmul.f32 %v145_v47, %v830_v0  ;;  %v148_v51 = vstv %s617_s28  ;;  %s623_s2 = sld [smem:[#allocation8 + $0x88]] }
  0x53   :  { %v130_v52 = vmul.f32 %v129_v44, %v127_v46  ;;  %v149_v54 = vmul.f32 %v148_v51, %v832_v1  ;;  %s868_s7 = sld [smem:[#allocation9 + $0x8]]  ;;  %v153_v62 = vstv %s858_s29  ;;  %s787_s29 = smov [#allocation11]  }
  0x54   :  { %v139_v55 = vmax.f32 %v138_v49, 0.0  ;;  %v157_v56 = vstv %s619_s0  ;;  %s625_s1 = sld [smem:[#allocation8 + $0x9]]  ;;  %s585_s0 = sshll.u32 %s787_s29, 4  ;;  %s586_s0 = int_to_ptr.vmem [resolvable:$true] %s585_s0 }
  0x55   :  { %v131_v57 = vadd.f32 %v130_v52, %v119_v48  ;;  %v150_v58 = vadd.f32 %v149_v54, %v146_v50  ;;  %v158_v59 = vmul.f32 %v157_v56, %v830_v0  ;;  %v160_v60 = vstv %s620_s30  ;;  %s626_s3 = sld [smem:[#allocation8 + $0x89]]  ;;  %s750_s30 = scalar_lea.vmem %s586_s0, 1024 }
  0x56   :  { %v142_v61 = vmul.f32 %v141_v53, %v139_v55  ;;  %v161_v63 = vmul.f32 %v160_v60, %v832_v1  ;;  %s873_s8 = sld [smem:[#allocation9 + $0x9]]  ;;  %v165_v9 = vstv %s863_s5  ;;  %p751_p6 = scmp.ne.s32.totalorder %s586_s0, %s750_s30 }
  0x57   :  { %v151_v2 = vmax.f32 %v150_v58, 0.0  ;;  %v169_v3 = vstv %s622_s6  ;;  %s628_s9 = sld [smem:[#allocation8 + $0xa]]  ;;  %p755_p7 = scmp.lt.s32.totalorder %s586_s0, %s586_s0 }
  0x58   :  { %v143_v4 = vadd.f32 %v142_v61, %v131_v57  ;;  %v162_v5 = vadd.f32 %v161_v63, %v158_v59  ;;  %v170_v6 = vmul.f32 %v169_v3, %v830_v0  ;;  %v172_v7 = vstv %s623_s2  ;;  %s629_s10 = sld [smem:[#allocation8 + $0x8a]]  ;;  %p756_p8 = scmp.lt.s32.totalorder %s750_s30, %s750_s30 }
  0x59   :  { %v154_v8 = vmul.f32 %v153_v62, %v151_v2  ;;  %v173_v10 = vmul.f32 %v172_v7, %v832_v1  ;;  %s878_s11 = sld [smem:[#allocation9 + $0xa]]  ;;  %v177_v18 = vstv %s868_s7 }
  0x5a   :  { %v163_v11 = vmax.f32 %v162_v5, 0.0  ;;  %v181_v12 = vstv %s625_s1  ;;  %s631_s12 = sld [smem:[#allocation8 + $0xb]]  ;;  %v267_v5 = vlaneseq  ;;  %p757_p9 = por %p756_p8, %p755_p7 }
  0x5b   :  { %v155_v13 = vadd.f32 %v154_v8, %v143_v4  ;;  %v174_v14 = vadd.f32 %v173_v10, %v170_v6  ;;  %v182_v15 = vmul.f32 %v181_v12, %v830_v0  ;;  %v184_v16 = vstv %s626_s3  ;;  %s632_s13 = sld [smem:[#allocation8 + $0x8b]] }
  0x5c   :  { %v166_v17 = vmul.f32 %v165_v9, %v163_v11  ;;  %v185_v19 = vmul.f32 %v184_v16, %v832_v1  ;;  %s883_s14 = sld [smem:[#allocation9 + $0xb]]  ;;  %v189_v27 = vstv %s873_s8  ;;  %p758_p10 = pnand %p757_p9, %p751_p6 }
  0x5d   :  { %v175_v20 = vmax.f32 %v174_v14, 0.0  ;;  %v193_v21 = vstv %s628_s9  ;;  %s634_s15 = sld [smem:[#allocation8 + $0xc]] }
  0x5e   :  { %v167_v22 = vadd.f32 %v166_v17, %v155_v13  ;;  %v186_v23 = vadd.f32 %v185_v19, %v182_v15  ;;  %v194_v24 = vmul.f32 %v193_v21, %v830_v0  ;;  %v196_v25 = vstv %s629_s10  ;;  %s635_s16 = sld [smem:[#allocation8 + $0x8c]] }
  0x5f   :  { %v178_v26 = vmul.f32 %v177_v18, %v175_v20  ;;  %v197_v28 = vmul.f32 %v196_v25, %v832_v1  ;;  %s888_s17 = sld [smem:[#allocation9 + $0xc]]  ;;  %v201_v36 = vstv %s878_s11  ;;  %v909_v18 = vshrl.u32 %v267_v5, 7  ;;  %v264_v20 = vld [vmem:[#allocation6] sm:$0xff] }
  0x60   :  { %v187_v29 = vmax.f32 %v186_v23, 0.0  ;;  %v205_v30 = vstv %s631_s12  ;;  %s637_s20 = sld [smem:[#allocation8 + $0xd]]  ;;  %vm265_vm0 = vcmp.gt.f32.partialorder %v264_v20, 0.5 }
  0x61   :  { %v179_v31 = vadd.f32 %v178_v26, %v167_v22  ;;  %v198_v32 = vadd.f32 %v197_v28, %v194_v24  ;;  %v206_v33 = vmul.f32 %v205_v30, %v830_v0  ;;  %v208_v34 = vstv %s632_s13  ;;  %s638_s21 = sld [smem:[#allocation8 + $0x8d]] }
  0x62   :  { %v190_v35 = vmul.f32 %v189_v27, %v187_v29  ;;  %v209_v37 = vmul.f32 %v208_v34, %v832_v1  ;;  %s893_s22 = sld [smem:[#allocation9 + $0xd]]  ;;  %v213_v45 = vstv %s883_s14  ;;  %v912_v23 = vsub.s32 0, %v909_v18 }
  0x63   :  { %v199_v38 = vmax.f32 %v198_v32, 0.0  ;;  %v217_v39 = vstv %s634_s15  ;;  %s640_s23 = sld [smem:[#allocation8 + $0xe]]  ;;  %v921_v25 = vsub.s32 3, %v909_v18  ;;  %vm275_vm1 = vcmp.gt.s32.totalorder %v909_v18, 0 }
  0x64   :  { %v191_v40 = vadd.f32 %v190_v35, %v179_v31  ;;  %v210_v41 = vadd.f32 %v209_v37, %v206_v33  ;;  %v218_v42 = vmul.f32 %v217_v39, %v830_v0  ;;  %v220_v43 = vstv %s635_s16  ;;  %s641_s24 = sld [smem:[#allocation8 + $0x8e]] }
  0x65   :  { %v202_v44 = vmul.f32 %v201_v36, %v199_v38  ;;  %v221_v46 = vmul.f32 %v220_v43, %v832_v1  ;;  %s898_s25 = sld [smem:[#allocation9 + $0xe]]  ;;  %v225_v54 = vstv %s888_s17  ;;  %v939_v30 = vsub.s32 4, %v909_v18 }
  0x66   :  { %v211_v47 = vmax.f32 %v210_v41, 0.0  ;;  %v229_v48 = vstv %s637_s20  ;;  %s643_s26 = sld [smem:[#allocation8 + $0xf]]  ;;  %vm285_vm2 = vcmp.gt.s32.totalorder %v909_v18, 1  ;;  %v943_v31 = vsub.s32 5, %v909_v18 }
  0x67   :  { %v203_v49 = vadd.f32 %v202_v44, %v191_v40  ;;  %v222_v50 = vadd.f32 %v221_v46, %v218_v42  ;;  %v230_v51 = vmul.f32 %v229_v48, %v830_v0  ;;  %v232_v52 = vstv %s638_s21  ;;  %s644_s27 = sld [smem:[#allocation8 + $0x8f]] }
  0x68   :  { %v214_v53 = vmul.f32 %v213_v45, %v211_v47  ;;  %v233_v55 = vmul.f32 %v232_v52, %v832_v1  ;;  %s645_s28 = sld [smem:[#allocation9 + $0xf]]  ;;  %v237_v63 = vstv %s893_s22  ;;  %vm296_vm10 = vcmp.gt.s32.totalorder %v909_v18, 2 }
  0x69   :  { %v223_v56 = vmax.f32 %v222_v50, 0.0  ;;  %v241_v57 = vstv %s640_s23  ;;  %v965_v34 = vsub.s32 6, %v909_v18  ;;  %v786_v35 = vmov 0  }
  0x6a   :  { %v215_v58 = vadd.f32 %v214_v53, %v203_v49  ;;  %v234_v59 = vadd.f32 %v233_v55, %v230_v51  ;;  %v242_v60 = vmul.f32 %v241_v57, %v830_v0  ;;  %v244_v61 = vstv %s641_s24 }
  0x6b   :  { %v226_v62 = vmul.f32 %v225_v54, %v223_v56  ;;  %v245_v2 = vmul.f32 %v244_v61, %v832_v1  ;;  %v249_v11 = vstv %s898_s25  ;;  %vm307_vm15 = vcmp.gt.s32.totalorder %v909_v18, 3 }
  0x6c   :  { %v235_v3 = vmax.f32 %v234_v59, 0.0  ;;  %v253_v4 = vstv %s643_s26  ;;  %v979_v38 = vsub.s32 7, %v909_v18 }
  0x6d   :  { %v227_v6 = vadd.f32 %v226_v62, %v215_v58  ;;  %v246_v7 = vadd.f32 %v245_v2, %v242_v60  ;;  %v254_v8 = vmul.f32 %v253_v4, %v830_v0  ;;  %v256_v9 = vstv %s644_s27 }
  0x6e   :  { %v238_v10 = vmul.f32 %v237_v63, %v235_v3  ;;  %v257_v12 = vmul.f32 %v256_v9, %v832_v1  ;;  %v261_v17 = vstv %s645_s28  ;;  %v915_v0 = vsub.s32 1, %v909_v18 }
  0x6f   :  { %v247_v13 = vmax.f32 %v246_v7, 0.0  ;;  %v918_v1 = vsub.s32 2, %v909_v18 }
  0x70   :  { %v239_v14 = vadd.f32 %v238_v10, %v227_v6  ;;  %v258_v15 = vadd.f32 %v257_v12, %v254_v8 }
  0x71   :  { %v250_v16 = vmul.f32 %v249_v11, %v247_v13 }
  0x72   :  { %v259_v19 = vmax.f32 %v258_v15, 0.0 }
  0x73   :  { %v251_v21 = vadd.f32 %v250_v16, %v239_v14 }
  0x74   :  { %v262_v22 = vmul.f32 %v261_v17, %v259_v19 }
  0x76   :  { %v263_v24 = vadd.f32 %v262_v22, %v251_v21 }
  0x78   :  { %v923_v26 = vsel %vm265_vm0, -inf, %v263_v24 }
  0x79   :  { %v928_v27 = vrot.slane %v923_v26, %v912_v23  ;;  %v932_v28 = vrot.slane %v923_v26, %v915_v0  ;;  %v936_v29 = vrot.slane %v923_v26, %v918_v1  ;;  %v953_v32 = vrot.slane %v923_v26, %v921_v25 }
  0x7a   :  { %v962_v33 = vrot.slane %v923_v26, %v939_v30  ;;  %v976_v37 = vrot.slane %v923_v26, %v943_v31  ;;  %v337_v41 = vrot.slane %v923_v26, %v965_v34  ;;  %v348_v44 = vrot.slane %v923_v26, %v979_v38 }
  0x7b   :  { %vm273_vm3 = vcmp.gt.f32.partialorder %v928_v27, %v923_v26  ;;  %vm274_vm4 = vcmp.eq.f32.partialorder %v928_v27, %v923_v26  ;;  %vm284_vm5 = vcmp.eq.f32.partialorder %v932_v28, %v923_v26  ;;  %vm283_vm7 = vcmp.gt.f32.partialorder %v932_v28, %v923_v26 }
  0x7c   :  { %vm276_vm6 = vmand %vm274_vm4, %vm275_vm1  ;;  %vm295_vm9 = vcmp.eq.f32.partialorder %v936_v29, %v923_v26  ;;  %vm294_vm12 = vcmp.gt.f32.partialorder %v936_v29, %v923_v26  ;;  %vm306_vm14 = vcmp.eq.f32.partialorder %v953_v32, %v923_v26  ;;  %vm305_vm1 = vcmp.gt.f32.partialorder %v953_v32, %v923_v26 }
  0x7d   :  { %vm277_vm8 = vmor %vm273_vm3, %vm276_vm6  ;;  %vm317_vm3 = vcmp.eq.f32.partialorder %v962_v33, %v923_v26  ;;  %vm318_vm4 = vcmp.gt.s32.totalorder %v909_v18, 4  ;;  %vm316_vm6 = vcmp.gt.f32.partialorder %v962_v33, %v923_v26 }
  0x7e   :  { %v278_v36 = vsel %vm277_vm8, 1, %v786_v35  ;;  %vm286_vm11 = vmand %vm284_vm5, %vm285_vm2  ;;  %vm328_vm8 = vcmp.eq.f32.partialorder %v976_v37, %v923_v26 }
  0x7f   :  { %vm287_vm13 = vmor %vm283_vm7, %vm286_vm11  ;;  %vm327_vm11 = vcmp.gt.f32.partialorder %v976_v37, %v923_v26 }
  0x80   :  { %v288_v39 = vsel %vm287_vm13, 1, %v786_v35  ;;  %vm297_vm0 = vmand %vm295_vm9, %vm296_vm10  ;;  %vm329_vm9 = vcmp.gt.s32.totalorder %v909_v18, 5  ;;  %vm339_vm13 = vcmp.eq.f32.partialorder %v337_v41, %v923_v26 }
  0x81   :  { %v289_v40 = vadd.s32 %v288_v39, %v278_v36  ;;  %vm298_vm2 = vmor %vm294_vm12, %vm297_vm0  ;;  %vm338_vm0 = vcmp.gt.f32.partialorder %v337_v41, %v923_v26 }
  0x82   :  { %v299_v42 = vsel %vm298_vm2, 1, %v786_v35  ;;  %vm308_vm5 = vmand %vm306_vm14, %vm307_vm15  ;;  %vm340_vm14 = vcmp.gt.s32.totalorder %v909_v18, 6  ;;  %vm349_vm2 = vcmp.gt.f32.partialorder %v348_v44, %v923_v26 }
  0x83   :  { %v300_v43 = vadd.s32 %v299_v42, %v289_v40  ;;  %vm309_vm7 = vmor %vm305_vm1, %vm308_vm5  ;;  %v354_v52 = vsel %vm349_vm2, 1, %v786_v35 }
  0x84   :  { %v310_v45 = vsel %vm309_vm7, 1, %v786_v35  ;;  %vm319_vm10 = vmand %vm317_vm3, %vm318_vm4 }
  0x85   :  { %v311_v46 = vadd.s32 %v310_v45, %v300_v43  ;;  %vm320_vm12 = vmor %vm316_vm6, %vm319_vm10 }
  0x86   :  { %v321_v47 = vsel %vm320_vm12, 1, %v786_v35  ;;  %vm330_vm15 = vmand %vm328_vm8, %vm329_vm9 }
  0x87   :  { %v322_v48 = vadd.s32 %v321_v47, %v311_v46  ;;  %vm331_vm1 = vmor %vm327_vm11, %vm330_vm15 }
  0x88   :  { %v332_v49 = vsel %vm331_vm1, 1, %v786_v35  ;;  %vm341_vm5 = vmand %vm339_vm13, %vm340_vm14  ;;  %vm421_vm13 = vcmask 130048  }
  0x89   :  { %v333_v50 = vadd.s32 %v332_v49, %v322_v48  ;;  %vm342_vm3 = vmor %vm338_vm0, %vm341_vm5 }
  0x8a   :  { %v343_v51 = vsel %vm342_vm3, 1, %v786_v35 }
  0x8b   :  { %v344_v53 = vadd.s32 %v343_v51, %v333_v50 }
  0x8d   :  { %v355_v54 = vadd.s32 %v354_v52, %v344_v53 }
  0x8f   :  { %v359_v55 = vrot.slane %v355_v54, %v912_v23  ;;  %v366_v56 = vrot.slane %v355_v54, %v915_v0  ;;  %v373_v57 = vrot.slane %v355_v54, %v918_v1  ;;  %v380_v58 = vrot.slane %v355_v54, %v921_v25 }
  0x90   :  { %v387_v59 = vrot.slane %v355_v54, %v939_v30  ;;  %v394_v60 = vrot.slane %v355_v54, %v943_v31  ;;  %v401_v3 = vrot.slane %v355_v54, %v965_v34  ;;  %v408_v6 = vrot.slane %v355_v54, %v979_v38 }
  0x91   :  { %vm360_vm4 = vcmp.eq.s32.totalorder %v359_v55, %v909_v18  ;;  %vm367_vm6 = vcmp.eq.s32.totalorder %v366_v56, %v909_v18  ;;  %vm374_vm7 = vcmp.eq.s32.totalorder %v373_v57, %v909_v18  ;;  %vm381_vm8 = vcmp.eq.s32.totalorder %v380_v58, %v909_v18 }
  0x92   :  { %v361_v61 = vsel %vm360_vm4, %v928_v27, 0.0  ;;  %v368_v62 = vsel %vm367_vm6, %v932_v28, 0.0  ;;  %v375_v63 = vsel %vm374_vm7, %v936_v29, 0.0  ;;  %vm388_vm9 = vcmp.eq.s32.totalorder %v387_v59, %v909_v18 }
  0x93   :  { %v369_v2 = vadd.f32 %v368_v62, %v361_v61  ;;  %v382_v4 = vsel %vm381_vm8, %v953_v32, 0.0  ;;  %vm395_vm10 = vcmp.eq.s32.totalorder %v394_v60, %v909_v18  ;;  %v389_v7 = vsel %vm388_vm9, %v962_v33, 0.0 }
  0x94   :  { %vm402_vm11 = vcmp.eq.s32.totalorder %v401_v3, %v909_v18  ;;  %v396_v9 = vsel %vm395_vm10, %v976_v37, 0.0  ;;  %vm409_vm12 = vcmp.eq.s32.totalorder %v408_v6, %v909_v18 }
  0x95   :  { %v376_v5 = vadd.f32 %v375_v63, %v369_v2  ;;  %v403_v11 = vsel %vm402_vm11, %v337_v41, 0.0  ;;  %v410_v13 = vsel %vm409_vm12, %v348_v44, 0.0 }
  0x97   :  { %v383_v8 = vadd.f32 %v382_v4, %v376_v5 }
  0x99   :  { %v390_v10 = vadd.f32 %v389_v7, %v383_v8 }
  0x9b   :  { %v397_v12 = vadd.f32 %v396_v9, %v390_v10 }
  0x9d   :  { %v404_v14 = vadd.f32 %v403_v11, %v397_v12 }
  0x9f   :  { %v411_v15 = vadd.f32 %v410_v13, %v404_v14 }
  0xa1   :  { %v415_v16 = vrot.slane %v411_v15, %v912_v23  ;;  %v436_v17 = vrot.slane %v411_v15, %v915_v0  ;;  %v457_v19 = vrot.slane %v411_v15, %v918_v1  ;;  %v478_v20 = vrot.slane %v411_v15, %v921_v25 }
  0xa2   :  { %v499_v21 = vrot.slane %v411_v15, %v939_v30  ;;  %v520_v22 = vrot.slane %v411_v15, %v943_v31  ;;  %v541_v24 = vrot.slane %v411_v15, %v965_v34  ;;  %v562_v18 = vrot.slane %v411_v15, %v979_v38 }
  0xa3   :  { %v416_v27 = vsub.f32 %v923_v26, %v415_v16  ;;  %v437_v28 = vsub.f32 %v923_v26, %v436_v17  ;;  %v458_v23 = vsub.f32 %v923_v26, %v457_v19  ;;  %v479_v0 = vsub.f32 %v923_v26, %v478_v20 }
  0xa4   :  { %v500_v1 = vsub.f32 %v923_v26, %v499_v21  ;;  %v521_v25 = vsub.f32 %v923_v26, %v520_v22  ;;  %v542_v29 = vsub.f32 %v923_v26, %v541_v24  ;;  %v563_v30 = vsub.f32 %v923_v26, %v562_v18 }
  0xa5   :  { %v417_v31 = vand.u32 2147483647, %v416_v27  ;;  %v438_v32 = vand.u32 2147483647, %v437_v28  ;;  %v459_v33 = vand.u32 2147483647, %v458_v23 }
  0xa6   :  { %v480_v34 = vand.u32 2147483647, %v479_v0  ;;  %v501_v35 = vand.u32 2147483647, %v500_v1  ;;  %v522_v36 = vand.u32 2147483647, %v521_v25 }
  0xa7   :  { %v418_v37 = vsub.f32 0.0, %v417_v31  ;;  %v439_v38 = vsub.f32 0.0, %v438_v32  ;;  %v460_v39 = vsub.f32 0.0, %v459_v33  ;;  %v543_v40 = vand.u32 2147483647, %v542_v29 }
  0xa8   :  { %v481_v41 = vsub.f32 0.0, %v480_v34  ;;  %v502_v42 = vsub.f32 0.0, %v501_v35  ;;  %v523_v43 = vsub.f32 0.0, %v522_v36  ;;  %v564_v44 = vand.u32 2147483647, %v563_v30 }
  0xa9   :  { %v419_v45 = vmul.f32 1.442695, %v418_v37  ;;  %v440_v46 = vmul.f32 1.442695, %v439_v38  ;;  %v461_v47 = vmul.f32 1.442695, %v460_v39 }
  0xaa   :  { %v482_v48 = vmul.f32 1.442695, %v481_v41  ;;  %v503_v26 = vmul.f32 1.442695, %v502_v42  ;;  %v544_v49 = vsub.f32 0.0, %v543_v40  ;;  %v565_v50 = vsub.f32 0.0, %v564_v44 }
  0xab   :  { %654 = vpow2.f32 %v419_v45  ;;  %v524_v51 = vmul.f32 1.442695, %v523_v43 }
  0xac   :  { %656 = vpow2.f32 %v440_v46  ;;  %v545_v52 = vmul.f32 1.442695, %v544_v49  ;;  %v566_v53 = vmul.f32 1.442695, %v565_v50 }
  0xad   :  { %658 = vpow2.f32 %v461_v47 }
  0xae   :  { %660 = vpow2.f32 %v482_v48 }
  0xaf   :  { %662 = vpow2.f32 %v503_v26 }
  0xb0   :  { %664 = vpow2.f32 %v524_v51 }
  0xb1   :  { %666 = vpow2.f32 %v545_v52 }
  0xb2   :  { %668 = vpow2.f32 %v566_v53 }
  0xb8   :  { %v1039_v54 = vpop.eup %654 }
  0xb9   :  { %v1041_v55 = vpop.eup %656  ;;  %v422_v56 = vsel %vm421_vm13, %v1039_v54, 0.0 }
  0xba   :  { %v1045_v57 = vpop.eup %658  ;;  %v423_v58 = vrot.slane %v422_v56, 4  ;;  %v442_v59 = vsel %vm421_vm13, %v1041_v55, 0.0 }
  0xbb   :  { %v1049_v60 = vpop.eup %660  ;;  %v443_v61 = vrot.slane %v442_v59, 4  ;;  %v463_v62 = vsel %vm421_vm13, %v1045_v57, 0.0 }
  0xbc   :  { %v1053_v63 = vpop.eup %662  ;;  %v424_v2 = vadd.f32 %v423_v58, %v422_v56  ;;  %v464_v3 = vrot.slane %v463_v62, 4  ;;  %v484_v4 = vsel %vm421_vm13, %v1049_v60, 0.0 }
  0xbd   :  { %v1057_v5 = vpop.eup %664  ;;  %v444_v6 = vadd.f32 %v443_v61, %v442_v59  ;;  %v485_v7 = vrot.slane %v484_v4, 4  ;;  %v505_v8 = vsel %vm421_vm13, %v1053_v63, 0.0 }
  0xbe   :  { %v1061_v9 = vpop.eup %666  ;;  %v425_v10 = vrot.slane %v424_v2, 2  ;;  %v465_v11 = vadd.f32 %v464_v3, %v463_v62  ;;  %v506_v12 = vrot.slane %v505_v8, 4  ;;  %v526_v13 = vsel %vm421_vm13, %v1057_v5, 0.0 }
  0xbf   :  { %v1065_v14 = vpop.eup %668  ;;  %v445_v15 = vrot.slane %v444_v6, 2  ;;  %v486_v16 = vadd.f32 %v485_v7, %v484_v4  ;;  %v527_v17 = vrot.slane %v526_v13, 4  ;;  %v547_v19 = vsel %vm421_vm13, %v1061_v9, 0.0 }
  0xc0   :  { %v426_v20 = vadd.f32 %v425_v10, %v424_v2  ;;  %v466_v21 = vrot.slane %v465_v11, 2  ;;  %v507_v22 = vadd.f32 %v506_v12, %v505_v8  ;;  %v548_v24 = vrot.slane %v547_v19, 4 }
  0xc1   :  { %v446_v18 = vadd.f32 %v445_v15, %v444_v6  ;;  %v487_v27 = vrot.slane %v486_v16, 2  ;;  %v528_v28 = vadd.f32 %v527_v17, %v526_v13  ;;  %v568_v23 = vsel %vm421_vm13, %v1065_v14, 0.0 }
  0xc2   :  { %v427_v0 = vrot.slane %v426_v20, 1  ;;  %v467_v1 = vadd.f32 %v466_v21, %v465_v11  ;;  %v508_v25 = vrot.slane %v507_v22, 2  ;;  %v549_v29 = vadd.f32 %v548_v24, %v547_v19 }
  0xc3   :  { %v447_v30 = vrot.slane %v446_v18, 1  ;;  %v488_v31 = vadd.f32 %v487_v27, %v486_v16  ;;  %v529_v32 = vrot.slane %v528_v28, 2  ;;  %v569_v33 = vrot.slane %v568_v23, 4 }
  0xc4   :  { %v428_v34 = vadd.f32 %v427_v0, %v426_v20  ;;  %v468_v35 = vrot.slane %v467_v1, 1  ;;  %v509_v36 = vadd.f32 %v508_v25, %v507_v22  ;;  %v550_v37 = vrot.slane %v549_v29, 2 }
  0xc5   :  { %v448_v38 = vadd.f32 %v447_v30, %v446_v18  ;;  %v489_v39 = vrot.slane %v488_v31, 1  ;;  %v530_v40 = vadd.f32 %v529_v32, %v528_v28  ;;  %v570_v41 = vadd.f32 %v569_v33, %v568_v23 }
  0xc6   :  { %670 = vrcp.f32 %v428_v34  ;;  %v469_v42 = vadd.f32 %v468_v35, %v467_v1  ;;  %v510_v43 = vrot.slane %v509_v36, 1  ;;  %v551_v44 = vadd.f32 %v550_v37, %v549_v29 }
  0xc7   :  { %672 = vrcp.f32 %v448_v38  ;;  %v490_v45 = vadd.f32 %v489_v39, %v488_v31  ;;  %v531_v46 = vrot.slane %v530_v40, 1  ;;  %v571_v47 = vrot.slane %v570_v41, 2 }
  0xc8   :  { %674 = vrcp.f32 %v469_v42  ;;  %v511_v48 = vadd.f32 %v510_v43, %v509_v36  ;;  %v552_v26 = vrot.slane %v551_v44, 1 }
  0xc9   :  { %676 = vrcp.f32 %v490_v45  ;;  %v532_v49 = vadd.f32 %v531_v46, %v530_v40  ;;  %v572_v50 = vadd.f32 %v571_v47, %v570_v41 }
  0xca   :  { %678 = vrcp.f32 %v511_v48  ;;  %v553_v51 = vadd.f32 %v552_v26, %v551_v44 }
  0xcb   :  { %680 = vrcp.f32 %v532_v49  ;;  %v573_v52 = vrot.slane %v572_v50, 1 }
  0xcc   :  { %682 = vrcp.f32 %v553_v51 }
  0xcd   :  { %v574_v53 = vadd.f32 %v573_v52, %v572_v50 }
  0xcf   :  { %684 = vrcp.f32 %v574_v53 }
  0xd3   :  { %v671_v56 = vpop.eup %670 }
  0xd4   :  { %v673_v58 = vpop.eup %672  ;;  %v431_v59 = vmul.f32 %v671_v56, %v1039_v54 }
  0xd5   :  { %v675_v61 = vpop.eup %674  ;;  %v451_v62 = vmul.f32 %v673_v58, %v1041_v55 }
  0xd6   :  { %v677_v2 = vpop.eup %676  ;;  %432 = vst.msk [vmem:[#allocation11] sm:$0xff] %vm421_vm13, %v431_v59  ;;  %v472_v3 = vmul.f32 %v675_v61, %v1045_v57 }
  0xd7   :  { %v679_v4 = vpop.eup %678  ;;  %453 = vst.msk [vmem:[#allocation11 + $0x8] sm:$0xff] %vm421_vm13, %v451_v62  ;;  %v493_v6 = vmul.f32 %v677_v2, %v1049_v60 }
  0xd8   :  { %v681_v7 = vpop.eup %680  ;;  %474 = vst.msk [vmem:[#allocation11 + $0x10] sm:$0xff] %vm421_vm13, %v472_v3  ;;  %v514_v8 = vmul.f32 %v679_v4, %v1053_v63 }
  0xd9   :  { %v683_v10 = vpop.eup %682  ;;  %495 = vst.msk [vmem:[#allocation11 + $0x18] sm:$0xff] %vm421_vm13, %v493_v6  ;;  %v535_v54 = vmul.f32 %v681_v7, %v1057_v5 }
  0xda   :  { %516 = vst.msk [vmem:[#allocation11 + $0x20] sm:$0xff] %vm421_vm13, %v514_v8  ;;  %v556_v55 = vmul.f32 %v683_v10, %v1061_v9 }
  0xdb   :  { %537 = vst.msk [vmem:[#allocation11 + $0x28] sm:$0xff] %vm421_vm13, %v535_v54 }
  0xdc   :  { %v685_v57 = vpop.eup %684  ;;  %558 = vst.msk [vmem:[#allocation11 + $0x30] sm:$0xff] %vm421_vm13, %v556_v55 }
  0xdd   :  { %v577_v60 = vmul.f32 %v685_v57, %v1065_v14 }
  0xdf   :  { %579 = vst.msk [vmem:[#allocation11 + $0x38] sm:$0xff] %vm421_vm13, %v577_v60 }
  0xe0   :  { %761 = shalt.err (!%p758_p10)
}
  0xe1   :  { %591 = dma.vmem_to_hbm [thread:$0]  %s586_s0, 1024, %s1097_s4, [#allocation4], %s781_s18, %s781_s18, %s782_s19  }
  0xe2   :  { %778 = dma.done.wait [#allocation4], 1024  }
  0xe3   :  { %779 = vsyncadd [#allocation4], 4294966272 }
  0xe4   :  { %595 = vsyncpa [#allocation3], 1 }
  0xe5   :  { %596 = vsyncpa [#allocation7], 1 }
  0xe6   :  { %597 = vsyncpa [#allocation4], 1 }
  0xe7   :  { %598 = vsyncpa [#allocation5], 1 }
  0xe8   :  { %599 = vsyncpa [#allocation10], 1 }

</bundles_post_ra>
